<compile_context>
chip_gen: v6e
topology: v6e:2x2x1
jax: 0.10.0
libtpu: 0.0.40
codegen_flags: <defaults>
</compile_context>

<pallas_src>
import math

import jax
import jax.numpy as jnp
from jax.experimental import pallas as pl
from jax.experimental.pallas import tpu as pltpu


# --------------------------------------------------------------------------- helpers
def _round_up(x, m):
    return ((x + m - 1) // m) * m


def _cdiv(a, b):
    return -(-a // b)


def _vmem_capacity_bytes():
    """Physical per-core VMEM (128 MiB v5e/v6e, 64 MiB v7x); conservative fallback."""
    try:
        info = pltpu.get_tpu_info()
        for attr in ("vmem_capacity_bytes", "vmem_size_bytes", "vmem_bytes"):
            v = getattr(info, attr, None)
            if v:
                return int(v)
    except Exception:
        pass
    return 64 << 20  # v7x-safe default


def _pick_batch_tile(max_rows, B, row_mult):
    """MXU/sublane-friendly batch tile that fits `max_rows` and keeps >=2 grid steps."""
    tb = max(row_mult, min(int(max_rows), 2048))
    if tb >= 256:
        tb = (tb // 256) * 256          # fill the 2x256x256 MXU (v6e/v7x)
    elif tb >= 128:
        tb = 128                        # fill the 4x128x128 MXU (v5e)
    else:
        tb = (tb // row_mult) * row_mult
    tb = max(row_mult, tb)
    tb = min(tb, _round_up(B, row_mult))          # don't over-tile tiny batches
    if tb >= B and B > row_mult:
        # keep at least 2 batch grid steps: lets "parallel" shard across v7x's two
        # TensorCores and keeps DMA/compute overlap alive.
        tb = max(row_mult, _round_up(_cdiv(B, 2), row_mult))
    return tb


def _plan(B, D, Hp, act_isz, w_isz, out_isz, vmem_cap, force_split=None, d_tile=None):
    budget = (vmem_cap * 3) // 4                      # headroom for Mosaic internals
    min_isz = min(act_isz, out_isz)
    row_mult = 8 if min_isz >= 4 else (16 if min_isz == 2 else 32)
    fixed = 2 << 20                                   # semaphores / internal scratch slack

    # Resident-weights fast path footprint: W1/W2 single-buffered (pl.Buffered(1)),
    # x/out double-buffered, f32 h & y intermediates + low-precision h copy per row.
    resident = 2 * D * Hp * w_isz + 2 * (Hp + D) * 4
    per_row = (2 * D * act_isz          # x tile (double-buffered)
               + 2 * D * out_isz        # out tile (double-buffered)
               + (Hp + D) * 4           # f32 h / y intermediates
               + Hp * w_isz)            # h cast fed to the decoder MXU

    if force_split is None:
        split = resident + fixed + row_mult * per_row > budget
    else:
        split = bool(force_split)

    if not split:
        tb = _pick_batch_tile((budget - resident - fixed) // per_row, B, row_mult)
        need = resident + fixed + tb * per_row
        vmem_limit = int(min(vmem_cap * 31 // 32, max(need * 5 // 4, 32 << 20)))
        return dict(split=False, tb=tb, vmem_limit=vmem_limit)

    # D-tiled fallback: stream W1 (K-tiles) / W2 (N-tiles), keep f32 h accumulator in VMEM.
    tb = _pick_batch_tile(512, B, row_mult)
    fixed_split = tb * Hp * (8 + w_isz) + 4 * Hp * 4 + fixed  # h scratch + temps + b1 bufs
    per_col = 2 * (tb * act_isz + 2 * Hp * w_isz + 4 + tb * out_isz) + tb * 4
    if d_tile is not None:
        td = max(128, (int(d_tile) // 128) * 128)
    else:
        td = int((budget - fixed_split) // per_col)
        td = max(128, min(2048, (td // 128) * 128))
    td = min(td, _round_up(D, 128))
    need = fixed_split + td * per_col
    vmem_limit = int(min(vmem_cap * 31 // 32, max(need * 5 // 4, 32 << 20)))
    return dict(split=True, tb=tb, td=td, vmem_limit=vmem_limit)


# --------------------------------------------------------------------------- kernels
def _fused_kernel(x_ref, w1_ref, b1_ref, w2_ref, b2_ref, o_ref):
    # Encoder: h = relu(x @ W1 + b1) -- MXU in the weight dtype, f32 accumulation.
    x = x_ref[...].astype(w1_ref.dtype)
    h = jnp.dot(x, w1_ref[...], preferred_element_type=jnp.float32)
    h = jnp.maximum(h + b1_ref[...], 0.0)
    # Decoder: y = sigmoid(h @ W2 + b2).
    y = jnp.dot(h.astype(w2_ref.dtype), w2_ref[...],
                preferred_element_type=jnp.float32) + b2_ref[...]
    # sigmoid(y) == 0.5*(tanh(y/2)+1): one EUP op/element instead of exp + divide.
    o_ref[...] = (0.5 * (jnp.tanh(0.5 * y) + 1.0)).astype(o_ref.dtype)


def _make_split_kernel(Dt, td, D):
    """Two-phase kernel over grid axis j in [0, 2*Dt): j<Dt encoder K-tiles, j>=Dt decoder N-tiles."""
    need_mask = (D % td) != 0

    def kernel(x_ref, w1_ref, b1_ref, w2_ref, b2_ref, o_ref, h_ref):
        j = pl.program_id(1)

        @pl.when(j < Dt)
        def _encode():
            @pl.when(j == 0)
            def _():
                h_ref[...] = jnp.zeros_like(h_ref)
            x = x_ref[...]
            w1 = w1_ref[...]
            if need_mask:
                # Last K tile reads past D: zero both operands so OOB garbage (even
                # NaN/Inf) cannot contaminate the accumulation.
                valid = D - j * td
                col = jax.lax.broadcasted_iota(jnp.int32, x.shape, 1)
                x = jnp.where(col < valid, x, jnp.zeros_like(x))
                row = jax.lax.broadcasted_iota(jnp.int32, w1.shape, 0)
                w1 = jnp.where(row < valid, w1, jnp.zeros_like(w1))
            h_ref[...] += jnp.dot(x.astype(w1.dtype), w1,
                                  preferred_element_type=jnp.float32)

        @pl.when(j >= Dt)
        def _decode():
            @pl.when(j == Dt)
            def _():
                h_ref[...] = jnp.maximum(h_ref[...] + b1_ref[...], 0.0)
            h = h_ref[...].astype(w2_ref.dtype)
            y = jnp.dot(h, w2_ref[...], preferred_element_type=jnp.float32) + b2_ref[...]
            o_ref[...] = (0.5 * (jnp.tanh(0.5 * y) + 1.0)).astype(o_ref.dtype)

    return kernel


# --------------------------------------------------------------------------- wrappers
def prepare_params(w1, b1, w2, b2, *, compute_dtype=None):
    """Cast / pad parameters ONCE (outside the per-step forward).

    w1 : (D, Hd)  encoder weight stored (in, out) == PyTorch W1.T
    b1 : (Hd,) or (1, Hd)
    w2 : (Hd, D)  decoder weight stored (in, out) == PyTorch W2.T
    b2 : (D,) or (1, D)
    Only the (small) hidden axis is padded to a lane multiple; the activation/feature
    axis D is left untouched so the forward never pads or slices activations.
    """
    D, Hd = w1.shape
    assert w2.shape == (Hd, D), "decoder weight shape mismatch"
    Hp = max(128, _round_up(Hd, 128))
    if compute_dtype is not None:
        w1 = w1.astype(compute_dtype)
        w2 = w2.astype(compute_dtype)
    b1 = jnp.asarray(b1, jnp.float32).reshape(1, Hd)
    b2 = jnp.asarray(b2, jnp.float32).reshape(1, D)
    w1p = jnp.pad(w1, ((0, 0), (0, Hp - Hd)))
    b1p = jnp.pad(b1, ((0, 0), (0, Hp - Hd)))
    w2p = jnp.pad(w2, ((0, Hp - Hd), (0, 0)))
    return w1p, b1p, w2p, b2


def _forward_resident(x2d, w1p, b1p, w2p, b2, out_dtype, plan):
    B, D = x2d.shape
    Hp = w1p.shape[1]
    tb = plan["tb"]
    nb = _cdiv(B, tb)
    cost = pl.CostEstimate(
        flops=4 * B * D * Hp,
        transcendentals=B * D,
        bytes_accessed=int(B * D * (x2d.dtype.itemsize + out_dtype.itemsize)
                           + 2 * D * Hp * w1p.dtype.itemsize + (Hp + D) * 4),
    )

    def call(resident_mode):
        def const(shape):
            if resident_mode is None:
                return pl.BlockSpec(shape, lambda i: (0, 0))
            return pl.BlockSpec(shape, lambda i: (0, 0), pipeline_mode=resident_mode)

        return pl.pallas_call(
            _fused_kernel,
            out_shape=jax.ShapeDtypeStruct((B, D), out_dtype),
            grid=(nb,),
            in_specs=[
                pl.BlockSpec((tb, D), lambda i: (i, 0)),  # x: pipelined along batch
                const((D, Hp)),                           # W1: resident
                const((1, Hp)),                           # b1: resident
                const((Hp, D)),                           # W2: resident
                const((1, D)),                            # b2: resident
            ],
            out_specs=pl.BlockSpec((tb, D), lambda i: (i, 0)),
            compiler_params=pltpu.CompilerParams(
                dimension_semantics=("parallel",),
                vmem_limit_bytes=plan["vmem_limit"],
            ),
            cost_estimate=cost,
        )(x2d, w1p, b1p, w2p, b2)

    try:
        # Keep the constant-index weights single-buffered (halves their VMEM footprint).
        return call(pl.Buffered(1))
    except Exception:
        # Fallback if this Pallas build rejects single-buffering on grid inputs.
        return call(None)


def _forward_split(x2d, w1p, b1p, w2p, b2, out_dtype, plan):
    B, D = x2d.shape
    Hp = w1p.shape[1]
    tb, td = plan["tb"], plan["td"]
    nb = _cdiv(B, tb)
    Dt = _cdiv(D, td)
    kernel = _make_split_kernel(Dt, td, D)
    cost = pl.CostEstimate(
        flops=4 * B * D * Hp,
        transcendentals=B * D,
        bytes_accessed=int(B * D * (x2d.dtype.itemsize + out_dtype.itemsize)
                           + 2 * nb * D * Hp * w1p.dtype.itemsize + (Hp + D) * 4),
    )
    return pl.pallas_call(
        kernel,
        out_shape=jax.ShapeDtypeStruct((B, D), out_dtype),
        grid=(nb, 2 * Dt),
        in_specs=[
            # phase 1 uses x/W1 K-tiles; during phase 2 their index stays put -> no re-DMA.
            pl.BlockSpec((tb, td), lambda i, j: (i, jnp.minimum(j, Dt - 1))),
            pl.BlockSpec((td, Hp), lambda i, j: (jnp.minimum(j, Dt - 1), 0)),
            pl.BlockSpec((1, Hp), lambda i, j: (0, 0)),
            # phase 2 streams W2/b2/out N-tiles; during phase 1 they sit at tile 0.
            pl.BlockSpec((Hp, td), lambda i, j: (0, jnp.maximum(j - Dt, 0))),
            pl.BlockSpec((1, td), lambda i, j: (0, jnp.maximum(j - Dt, 0))),
        ],
        out_specs=pl.BlockSpec((tb, td), lambda i, j: (i, jnp.maximum(j - Dt, 0))),
        scratch_shapes=[pltpu.VMEM((tb, Hp), jnp.float32)],   # f32 hidden accumulator
        compiler_params=pltpu.CompilerParams(
            dimension_semantics=("parallel", "arbitrary"),
            vmem_limit_bytes=plan["vmem_limit"],
        ),
        cost_estimate=cost,
    )(x2d, w1p, b1p, w2p, b2)


def autoencoder_forward(x, params, *, out_dtype=None, force_split=None, d_tile=None):
    """Fused AutoEncoder forward.

    x      : (B, C, H, W) (any trailing shape whose product == input_dim)
    params : output of prepare_params()
    out_dtype : optional output dtype (e.g. jnp.bfloat16) to halve the output write.
    """
    w1p, b1p, w2p, b2 = params
    D, Hp = w1p.shape
    orig_shape = x.shape
    B = orig_shape[0]
    assert math.prod(orig_shape[1:]) == D, "input feature size does not match encoder"
    x2d = x.reshape(B, D)                          # metadata-only view, no copy
    out_dtype = jnp.dtype(x.dtype if out_dtype is None else out_dtype)

    plan = _plan(B, D, Hp,
                 jnp.dtype(x2d.dtype).itemsize,
                 jnp.dtype(w1p.dtype).itemsize,
                 out_dtype.itemsize,
                 _vmem_capacity_bytes(),
                 force_split=force_split, d_tile=d_tile)

    if plan["split"]:
        out2d = _forward_split(x2d, w1p, b1p, w2p, b2, out_dtype, plan)
    else:
        out2d = _forward_resident(x2d, w1p, b1p, w2p, b2, out_dtype, plan)
    return out2d.reshape(orig_shape)               # x.view(input.size())


def _init_linear(key, fan_in, fan_out, dtype=jnp.float32):
    # PyTorch nn.Linear default init: U(-1/sqrt(fan_in), 1/sqrt(fan_in)).
    kw, kb = jax.random.split(key)
    bound = 1.0 / jnp.sqrt(jnp.float32(fan_in))
    w = jax.random.uniform(kw, (fan_in, fan_out), dtype, -bound, bound)  # (in, out) == W_pt.T
    b = jax.random.uniform(kb, (1, fan_out), dtype, -bound, bound)
    return w, b


if __name__ == "__main__":
    key = jax.random.PRNGKey(0)
    k_x, k_enc, k_dec = jax.random.split(key, 3)

    # small shapes: batch=2, channels=4, spatial=16 -> input_dim = 4*16*16 = 1024
    B, C, H, W = 2, 4, 16, 16
    input_dim = C * H * W
    hidden_dim = 32

    x = jax.random.normal(k_x, (B, C, H, W), dtype=jnp.float32)
    w1, b1 = _init_linear(k_enc, input_dim, hidden_dim)   # encoder Linear
    w2, b2 = _init_linear(k_dec, hidden_dim, input_dim)   # decoder Linear

    # plain-JAX reference
    h_ref = jnp.maximum(x.reshape(B, -1) @ w1 + b1, 0.0)
    y_ref = jax.nn.sigmoid(h_ref @ w2 + b2).reshape(x.shape)

    # 1) exact-semantics resident-weight path (f32 operands, f32 accumulate)
    p_f32 = prepare_params(w1, b1, w2, b2)
    out_f32 = autoencoder_forward(x, p_f32)
    jax.block_until_ready(out_f32)
    assert out_f32.shape == x.shape and out_f32.dtype == x.dtype
    assert jnp.allclose(out_f32, y_ref, atol=1e-5), "f32 resident path mismatch vs reference"

    # 2) fast MXU path: bf16 weights + bf16 output (f32 accumulation inside)
    p_bf16 = prepare_params(w1, b1, w2, b2, compute_dtype=jnp.bfloat16)
    out_bf16 = autoencoder_forward(x, p_bf16, out_dtype=jnp.bfloat16)
    jax.block_until_ready(out_bf16)
    assert jnp.allclose(out_bf16.astype(jnp.float32), y_ref, atol=3e-2), "bf16 path mismatch"

    # 3) D-tiled fallback (auto-selected when W1+W2 don't fit VMEM, e.g. v7x + large D);
    #    forced here with an uneven D tile so the masked partial-tile path is exercised.
    out_split = autoencoder_forward(x, p_f32, force_split=True, d_tile=384)
    jax.block_until_ready(out_split)
    assert jnp.allclose(out_split, y_ref, atol=2e-5), "split (D-tiled) path mismatch"

    print("KERNEL_OK")
</pallas_src>

<mosaic_0001>
module attributes {stable_mosaic.version = 11 : i64} {
  func.func @_fused_kernel(%arg0: i32, %arg1: memref<8x1024xf32, #tpu.memory_space<vmem>>, %arg2: memref<1024x128xf32, #tpu.memory_space<vmem>>, %arg3: memref<1x128xf32, #tpu.memory_space<vmem>>, %arg4: memref<128x1024xf32, #tpu.memory_space<vmem>>, %arg5: memref<1x1024xf32, #tpu.memory_space<vmem>>, %arg6: memref<8x1024xf32, #tpu.memory_space<vmem>>) attributes {dimension_semantics = [#tpu.dimension_semantics<parallel>], iteration_bounds = array<i64: 1>, scalar_prefetch = 0 : i64, scratch_operands = 0 : i64, tpu.core_type = #tpu.core_type<tc>, window_params = [{transform_indices = @transform_0, window_bounds = array<i64: 8, 1024>}, {pipeline_mode = #tpu.pipeline_mode<synchronous>, transform_indices = @transform_1, window_bounds = array<i64: 1024, 128>}, {pipeline_mode = #tpu.pipeline_mode<synchronous>, transform_indices = @transform_2, window_bounds = array<i64: 1, 128>}, {pipeline_mode = #tpu.pipeline_mode<synchronous>, transform_indices = @transform_3, window_bounds = array<i64: 128, 1024>}, {pipeline_mode = #tpu.pipeline_mode<synchronous>, transform_indices = @transform_4, window_bounds = array<i64: 1, 1024>}, {transform_indices = @transform_5, window_bounds = array<i64: 8, 1024>}]} {
    %c0 = arith.constant 0 : index
    %c0_0 = arith.constant 0 : index
    %0 = vector.load %arg1[%c0, %c0_0] : memref<8x1024xf32, #tpu.memory_space<vmem>>, vector<8x1024xf32>
    %c0_1 = arith.constant 0 : index
    %c0_2 = arith.constant 0 : index
    %1 = vector.load %arg2[%c0_1, %c0_2] : memref<1024x128xf32, #tpu.memory_space<vmem>>, vector<1024x128xf32>
    %cst = arith.constant dense<0.000000e+00> : vector<8x128xf32>
    %2 = tpu.matmul %0, %1, %cst {dimension_numbers = #tpu.dot_dimension_numbers<[1], [0], [0], [1], [0, 0, 1, 1], [], []>} : vector<8x1024xf32>, vector<1024x128xf32>, vector<8x128xf32> -> vector<8x128xf32>
    %c0_3 = arith.constant 0 : index
    %c0_4 = arith.constant 0 : index
    %3 = vector.load %arg3[%c0_3, %c0_4] : memref<1x128xf32, #tpu.memory_space<vmem>>, vector<1x128xf32>
    %4 = vector.broadcast %3 : vector<1x128xf32> to vector<8x128xf32>
    %5 = arith.addf %2, %4 : vector<8x128xf32>
    %cst_5 = arith.constant 0.000000e+00 : f32
    %6 = vector.broadcast %cst_5 : f32 to vector<8x128xf32>
    %7 = arith.maximumf %5, %6 : vector<8x128xf32>
    %c0_6 = arith.constant 0 : index
    %c0_7 = arith.constant 0 : index
    %8 = vector.load %arg4[%c0_6, %c0_7] : memref<128x1024xf32, #tpu.memory_space<vmem>>, vector<128x1024xf32>
    %cst_8 = arith.constant dense<0.000000e+00> : vector<8x1024xf32>
    %9 = tpu.matmul %7, %8, %cst_8 {dimension_numbers = #tpu.dot_dimension_numbers<[1], [0], [0], [1], [0, 0, 1, 1], [], []>} : vector<8x128xf32>, vector<128x1024xf32>, vector<8x1024xf32> -> vector<8x1024xf32>
    %c0_9 = arith.constant 0 : index
    %c0_10 = arith.constant 0 : index
    %10 = vector.load %arg5[%c0_9, %c0_10] : memref<1x1024xf32, #tpu.memory_space<vmem>>, vector<1x1024xf32>
    %11 = vector.broadcast %10 : vector<1x1024xf32> to vector<8x1024xf32>
    %12 = arith.addf %9, %11 : vector<8x1024xf32>
    %cst_11 = arith.constant 5.000000e-01 : f32
    %13 = vector.broadcast %cst_11 : f32 to vector<8x1024xf32>
    %14 = arith.mulf %13, %12 : vector<8x1024xf32>
    %15 = math.tanh %14 : vector<8x1024xf32>
    %cst_12 = arith.constant 1.000000e+00 : f32
    %16 = vector.broadcast %cst_12 : f32 to vector<8x1024xf32>
    %17 = arith.addf %15, %16 : vector<8x1024xf32>
    %cst_13 = arith.constant 5.000000e-01 : f32
    %18 = vector.broadcast %cst_13 : f32 to vector<8x1024xf32>
    %19 = arith.mulf %18, %17 : vector<8x1024xf32>
    %c0_14 = arith.constant 0 : index
    %c0_15 = arith.constant 0 : index
    %20 = vector.load %arg6[%c0_14, %c0_15] : memref<8x1024xf32, #tpu.memory_space<vmem>>, vector<8x1024xf32>
    tpu.vector_store %arg6[%c0_14, %c0_15], %19 {strides = array<i32>} : memref<8x1024xf32, #tpu.memory_space<vmem>>, vector<8x1024xf32>,
    return
  }
  func.func @transform_0(%arg0: i32) -> (i32, i32) {
    %c0_i32 = arith.constant 0 : i32
    %c0_i32_0 = arith.constant 0 : i32
    return %arg0, %c0_i32 : i32, i32
  }
  func.func @transform_1(%arg0: i32) -> (i32, i32) {
    %c0_i32 = arith.constant 0 : i32
    %c0_i32_0 = arith.constant 0 : i32
    %c0_i32_1 = arith.constant 0 : i32
    return %c0_i32, %c0_i32_0 : i32, i32
  }
  func.func @transform_2(%arg0: i32) -> (i32, i32) {
    %c0_i32 = arith.constant 0 : i32
    %c0_i32_0 = arith.constant 0 : i32
    %c0_i32_1 = arith.constant 0 : i32
    return %c0_i32, %c0_i32_0 : i32, i32
  }
  func.func @transform_3(%arg0: i32) -> (i32, i32) {
    %c0_i32 = arith.constant 0 : i32
    %c0_i32_0 = arith.constant 0 : i32
    %c0_i32_1 = arith.constant 0 : i32
    return %c0_i32, %c0_i32_0 : i32, i32
  }
  func.func @transform_4(%arg0: i32) -> (i32, i32) {
    %c0_i32 = arith.constant 0 : i32
    %c0_i32_0 = arith.constant 0 : i32
    %c0_i32_1 = arith.constant 0 : i32
    return %c0_i32, %c0_i32_0 : i32, i32
  }
  func.func @transform_5(%arg0: i32) -> (i32, i32) {
    %c0_i32 = arith.constant 0 : i32
    %c0_i32_0 = arith.constant 0 : i32
    return %arg0, %c0_i32 : i32, i32
  }
}

module attributes {stable_mosaic.version = 11 : i64} {
  func.func @_fused_kernel(%arg0: i32, %arg1: memref<8x1024xf32, #tpu.memory_space<vmem>>, %arg2: memref<1024x128xf32, #tpu.memory_space<vmem>>, %arg3: memref<1x128xf32, #tpu.memory_space<vmem>>, %arg4: memref<128x1024xf32, #tpu.memory_space<vmem>>, %arg5: memref<1x1024xf32, #tpu.memory_space<vmem>>, %arg6: memref<8x1024xf32, #tpu.memory_space<vmem>>) attributes {dimension_semantics = [#tpu.dimension_semantics<parallel>], iteration_bounds = array<i64: 1>, scalar_prefetch = 0 : i64, scratch_operands = 0 : i64, tpu.core_type = #tpu.core_type<tc>, window_params = [{transform_indices = @transform_0, window_bounds = array<i64: 8, 1024>}, {pipeline_mode = #tpu.pipeline_mode<synchronous>, transform_indices = @transform_1, window_bounds = array<i64: 1024, 128>}, {pipeline_mode = #tpu.pipeline_mode<synchronous>, transform_indices = @transform_2, window_bounds = array<i64: 1, 128>}, {pipeline_mode = #tpu.pipeline_mode<synchronous>, transform_indices = @transform_3, window_bounds = array<i64: 128, 1024>}, {pipeline_mode = #tpu.pipeline_mode<synchronous>, transform_indices = @transform_4, window_bounds = array<i64: 1, 1024>}, {transform_indices = @transform_5, window_bounds = array<i64: 8, 1024>}]} {
    %c0 = arith.constant 0 : index
    %c0_0 = arith.constant 0 : index
    %0 = vector.load %arg1[%c0, %c0_0] : memref<8x1024xf32, #tpu.memory_space<vmem>>, vector<8x1024xf32>
    %c0_1 = arith.constant 0 : index
    %c0_2 = arith.constant 0 : index
    %1 = vector.load %arg2[%c0_1, %c0_2] : memref<1024x128xf32, #tpu.memory_space<vmem>>, vector<1024x128xf32>
    %cst = arith.constant dense<0.000000e+00> : vector<8x128xf32>
    %2 = tpu.matmul %0, %1, %cst {dimension_numbers = #tpu.dot_dimension_numbers<[1], [0], [0], [1], [0, 0, 1, 1], [], []>} : vector<8x1024xf32>, vector<1024x128xf32>, vector<8x128xf32> -> vector<8x128xf32>
    %c0_3 = arith.constant 0 : index
    %c0_4 = arith.constant 0 : index
    %3 = vector.load %arg3[%c0_3, %c0_4] : memref<1x128xf32, #tpu.memory_space<vmem>>, vector<1x128xf32>
    %4 = vector.broadcast %3 : vector<1x128xf32> to vector<8x128xf32>
    %5 = arith.addf %2, %4 : vector<8x128xf32>
    %cst_5 = arith.constant 0.000000e+00 : f32
    %6 = vector.broadcast %cst_5 : f32 to vector<8x128xf32>
    %7 = arith.maximumf %5, %6 : vector<8x128xf32>
    %c0_6 = arith.constant 0 : index
    %c0_7 = arith.constant 0 : index
    %8 = vector.load %arg4[%c0_6, %c0_7] : memref<128x1024xf32, #tpu.memory_space<vmem>>, vector<128x1024xf32>
    %cst_8 = arith.constant dense<0.000000e+00> : vector<8x1024xf32>
    %9 = tpu.matmul %7, %8, %cst_8 {dimension_numbers = #tpu.dot_dimension_numbers<[1], [0], [0], [1], [0, 0, 1, 1], [], []>} : vector<8x128xf32>, vector<128x1024xf32>, vector<8x1024xf32> -> vector<8x1024xf32>
    %c0_9 = arith.constant 0 : index
    %c0_10 = arith.constant 0 : index
    %10 = vector.load %arg5[%c0_9, %c0_10] : memref<1x1024xf32, #tpu.memory_space<vmem>>, vector<1x1024xf32>
    %11 = vector.broadcast %10 : vector<1x1024xf32> to vector<8x1024xf32>
    %12 = arith.addf %9, %11 : vector<8x1024xf32>
    %cst_11 = arith.constant 5.000000e-01 : f32
    %13 = vector.broadcast %cst_11 : f32 to vector<8x1024xf32>
    %14 = arith.mulf %13, %12 : vector<8x1024xf32>
    %15 = math.tanh %14 : vector<8x1024xf32>
    %cst_12 = arith.constant 1.000000e+00 : f32
    %16 = vector.broadcast %cst_12 : f32 to vector<8x1024xf32>
    %17 = arith.addf %15, %16 : vector<8x1024xf32>
    %cst_13 = arith.constant 5.000000e-01 : f32
    %18 = vector.broadcast %cst_13 : f32 to vector<8x1024xf32>
    %19 = arith.mulf %18, %17 : vector<8x1024xf32>
    %c0_14 = arith.constant 0 : index
    %c0_15 = arith.constant 0 : index
    %20 = vector.load %arg6[%c0_14, %c0_15] : memref<8x1024xf32, #tpu.memory_space<vmem>>, vector<8x1024xf32>
    tpu.vector_store %arg6[%c0_14, %c0_15], %19 {strides = array<i32>} : memref<8x1024xf32, #tpu.memory_space<vmem>>, vector<8x1024xf32>,
    return
  }
  func.func @transform_0(%arg0: i32) -> (i32, i32) {
    %c0_i32 = arith.constant 0 : i32
    %c0_i32_0 = arith.constant 0 : i32
    return %arg0, %c0_i32 : i32, i32
  }
  func.func @transform_1(%arg0: i32) -> (i32, i32) {
    %c0_i32 = arith.constant 0 : i32
    %c0_i32_0 = arith.constant 0 : i32
    %c0_i32_1 = arith.constant 0 : i32
    return %c0_i32, %c0_i32_0 : i32, i32
  }
  func.func @transform_2(%arg0: i32) -> (i32, i32) {
    %c0_i32 = arith.constant 0 : i32
    %c0_i32_0 = arith.constant 0 : i32
    %c0_i32_1 = arith.constant 0 : i32
    return %c0_i32, %c0_i32_0 : i32, i32
  }
  func.func @transform_3(%arg0: i32) -> (i32, i32) {
    %c0_i32 = arith.constant 0 : i32
    %c0_i32_0 = arith.constant 0 : i32
    %c0_i32_1 = arith.constant 0 : i32
    return %c0_i32, %c0_i32_0 : i32, i32
  }
  func.func @transform_4(%arg0: i32) -> (i32, i32) {
    %c0_i32 = arith.constant 0 : i32
    %c0_i32_0 = arith.constant 0 : i32
    %c0_i32_1 = arith.constant 0 : i32
    return %c0_i32, %c0_i32_0 : i32, i32
  }
  func.func @transform_5(%arg0: i32) -> (i32, i32) {
    %c0_i32 = arith.constant 0 : i32
    %c0_i32_0 = arith.constant 0 : i32
    return %arg0, %c0_i32 : i32, i32
  }
}

</mosaic_0001>

<bundles_post_ra>
// kernel: tpu_custom_call.1
= control target key start
LH: loop header
LB: loop body
LE: loop exit
PB: predicated region body
PF: predicated region fallthrough
CT: control target
= control target key end

     0   :  { %10 = vsyncpa [#allocation3], 0  ;;  %s1583_s0 = inlined_call_operand.hbm [shape: f32[2,1024], index: 0, kind: input, shape index: {}]   ;;  %s1584_s1 = inlined_call_operand.hbm [shape: f32[1024,128], index: 1, kind: input, shape index: {}]   ;;  %s1585_s2 = inlined_call_operand.vmem [shape: f32[1,128], index: 2, kind: input, shape index: {}]   ;;  %s1586_s3 = inlined_call_operand.hbm [shape: f32[128,1024], index: 3, kind: input, shape index: {}]   ;;  %s1587_s4 = inlined_call_operand.hbm [shape: f32[1,1024], index: 4, kind: input, shape index: {}]   ;;  %s1588_s5 = inlined_call_operand.hbm [shape: f32[2,1024], index: 5, kind: output, shape index: {}]  }
   0x1   :  { %11 = vsyncpa [#allocation6], 0 }
   0x2   :  { %12 = vsyncpa [#allocation9], 0 }
   0x3   :  { %13 = vsyncpa [#allocation4], 0 }
   0x4   :  { %18 = vsyncadd [#allocation3], 768  ;;  %s1477_s18 = smov [#allocation5]  }
   0x5   :  { %s31_s19 = sshll.u32 %s1477_s18, 4  ;;  %s32_s19 = int_to_ptr.vmem [resolvable:$true] %s31_s19 }
   0x6   :  { %s1377_s20 = scalar_lea.vmem %s32_s19, 16384  ;;  %p1382_p1 = scmp.lt.s32.totalorder %s32_s19, %s32_s19 }
   0x7   :  { %p1378_p0 = scmp.ne.s32.totalorder %s32_s19, %s1377_s20  ;;  %p1383_p2 = scmp.lt.s32.totalorder %s1377_s20, %s1377_s20 }
   0x9   :  { %p1384_p3 = por %p1383_p2, %p1382_p1 }
   0xb   :  { %p1385_p4 = pnand %p1384_p3, %p1378_p0 }
   0xd   :  { %1388 = shalt.err (!%p1385_p4)
}
   0xe   :  { %s1478_s21 = smov 128   ;;  %s1479_s22 = smov 8  }
   0xf   :  { %37 = dma.hbm_to_vmem [thread:$0]  %s1584_s1, 16384, %s32_s19, [#allocation6], %s1478_s21, %s1478_s21, %s1479_s22  }
  0x10   :  { %s1480_s25 = smov [#allocation2]  }
  0x11   :  { %s19_s26 = sshll.u32 %s1480_s25, 4  ;;  %s20_s26 = int_to_ptr.vmem [resolvable:$true] %s19_s26 }
  0x12   :  { %s1397_s27 = scalar_lea.vmem %s20_s26, 256  ;;  %s1401_s28 = scalar_lea.vmem %s20_s26, 1024 }
  0x13   :  { %p1398_p5 = scmp.ne.s32.totalorder %s20_s26, %s1397_s27  ;;  %p1402_p6 = scmp.lt.s32.totalorder %s20_s26, %s20_s26 }
  0x14   :  { %p1403_p7 = scmp.lt.s32.totalorder %s1401_s28, %s1397_s27 }
  0x16   :  { %p1404_p8 = por %p1403_p7, %p1402_p6 }
  0x18   :  { %p1405_p9 = pnand %p1404_p8, %p1398_p5 }
  0x1a   :  { %1408 = shalt.err (!%p1405_p9)
}
  0x1b   :  { %s1481_s29 = smov 256   ;;  %s1482_s30 = smov 16  }
  0x1c   :  { %25 = dma.hbm_to_vmem [thread:$0]  %s1583_s0, 256, %s20_s26, [#allocation3], %s1481_s29, %s1481_s29, %s1482_s30  }
  0x1d   :  { %s1483_s1 = smov [#allocation7]  }
  0x1e   :  { %s45_s8 = sshll.u32 %s1483_s1, 4  ;;  %s46_s8 = int_to_ptr.vmem [resolvable:$true] %s45_s8 }
  0x1f   :  { %s1417_s9 = scalar_lea.vmem %s46_s8, 16384  ;;  %p1422_p11 = scmp.lt.s32.totalorder %s46_s8, %s46_s8 }
  0x20   :  { %p1418_p10 = scmp.ne.s32.totalorder %s46_s8, %s1417_s9  ;;  %p1423_p12 = scmp.lt.s32.totalorder %s1417_s9, %s1417_s9 }
  0x22   :  { %p1424_p13 = por %p1423_p12, %p1422_p11 }
  0x24   :  { %p1425_p0 = pnand %p1424_p13, %p1418_p10 }
  0x26   :  { %1428 = shalt.err (!%p1425_p0)
}
  0x27   :  { %s1484_s10 = smov 1024   ;;  %s1485_s11 = smov 64  }
  0x28   :  { %51 = dma.hbm_to_vmem [thread:$0]  %s1586_s3, 16384, %s46_s8, [#allocation6], %s1484_s10, %s1484_s10, %s1485_s11  }
  0x29   :  { %s1486_s14 = smov [#allocation8]  }
  0x2a   :  { %s58_s15 = sshll.u32 %s1486_s14, 4  ;;  %s59_s15 = int_to_ptr.vmem [resolvable:$true] %s58_s15 }
  0x2b   :  { %s1437_s0 = scalar_lea.vmem %s59_s15, 128  ;;  %p1442_p2 = scmp.lt.s32.totalorder %s59_s15, %s59_s15 }
  0x2c   :  { %p1438_p1 = scmp.ne.s32.totalorder %s59_s15, %s1437_s0  ;;  %p1443_p3 = scmp.lt.s32.totalorder %s1437_s0, %s1437_s0 }
  0x2e   :  { %p1444_p4 = por %p1443_p3, %p1442_p2 }
  0x30   :  { %p1445_p5 = pnand %p1444_p4, %p1438_p1 }
  0x32   :  { %1448 = shalt.err (!%p1445_p5)
}
  0x33   :  { %61 = dma.hbm_to_vmem [thread:$0]  %s1587_s4, 128, %s59_s15, [#allocation9]  }
  0x34   :  { %1469 = dma.done.wait [#allocation3], 1024  }
  0x35   :  { %1470 = vsyncadd [#allocation3], 4294966272 }
  0x36   :  { %1471 = dma.done.wait [#allocation6], 32768  }
  0x37   :  { %1472 = vsyncadd [#allocation6], 4294934528 }
  0x38   :  { %1473 = dma.done.wait [#allocation9], 128  }
  0x39   :  { %1474 = vsyncadd [#allocation9], 4294967168  ;;  %v113_v0 = vld [vmem:[#allocation5 + $0xf8] sm:$0xff]  ;;  %v112_v4 = vld [vmem:[#allocation5 + $0xf0] sm:$0xff]  ;;  %v1487_v30 = vmov 1983009808   ;;  %v232_v32 = vlaneseq }
  0x3a   :  { %v145_v1 = vld [vmem:[#allocation5 + $0x1f8] sm:$0xff]  ;;  %1188 = vmatprep.subr.mxu0 %v113_v0  ;;  %v144_v5 = vld [vmem:[#allocation5 + $0x1f0] sm:$0xff]  ;;  %v111_v8 = vld [vmem:[#allocation5 + $0xe8] sm:$0xff]  ;;  %v230_v31 = vunpack.c.l.s4 %v1487_v30 }
  0x3b   :  { %v97_v2 = vld [vmem:[#allocation5 + $0x78] sm:$0xff]  ;;  %1223 = vmatprep.subr.mxu1 %v145_v1  ;;  %v96_v6 = vld [vmem:[#allocation5 + $0x70] sm:$0xff]  ;;  %v143_v9 = vld [vmem:[#allocation5 + $0x1e8] sm:$0xff]  ;;  %v1535_v42 = vshrl.u32 %v232_v32, 7 }
  0x3c   :  { %v129_v3 = vld [vmem:[#allocation5 + $0x178] sm:$0xff]  ;;  %1189 = vmatpush3.msra.mxu0 %v97_v2  ;;  %v128_v7 = vld [vmem:[#allocation5 + $0x170] sm:$0xff]  ;;  %v95_v10 = vld [vmem:[#allocation5 + $0x68] sm:$0xff]  ;;  %v231_v41 = vunpack.c.0.s8 %v230_v31 }
  0x3d   :  { %1224 = vmatpush3.msra.mxu1 %v129_v3  ;;  %1190 = vmatprep.subr.mxu0 %v112_v4  ;;  %v127_v11 = vld [vmem:[#allocation5 + $0x168] sm:$0xff]  ;;  %v110_v12 = vld [vmem:[#allocation5 + $0xe0] sm:$0xff]  ;;  %v109_v16 = vld [vmem:[#allocation5 + $0xd8] sm:$0xff] }
  0x3e   :  { %1225 = vmatprep.subr.mxu1 %v144_v5  ;;  %1191 = vmatpush3.msra.mxu0 %v96_v6  ;;  %v142_v13 = vld [vmem:[#allocation5 + $0x1e0] sm:$0xff]  ;;  %v141_v17 = vld [vmem:[#allocation5 + $0x1d8] sm:$0xff]  ;;  %v108_v20 = vld [vmem:[#allocation5 + $0xd0] sm:$0xff]  ;;  %v1538_v55 = vsub.s32 %v231_v41, %v1535_v42 }
  0x3f   :  { %1226 = vmatpush3.msra.mxu1 %v128_v7  ;;  %1192 = vmatprep.subr.mxu0 %v111_v8  ;;  %v94_v14 = vld [vmem:[#allocation5 + $0x60] sm:$0xff]  ;;  %v93_v18 = vld [vmem:[#allocation5 + $0x58] sm:$0xff]  ;;  %v140_v21 = vld [vmem:[#allocation5 + $0x1d0] sm:$0xff] }
  0x40   :  { %1227 = vmatprep.subr.mxu1 %v143_v9  ;;  %v126_v15 = vld [vmem:[#allocation5 + $0x160] sm:$0xff]  ;;  %1193 = vmatpush3.msra.mxu0 %v95_v10  ;;  %v125_v19 = vld [vmem:[#allocation5 + $0x158] sm:$0xff]  ;;  %v92_v22 = vld [vmem:[#allocation5 + $0x50] sm:$0xff] }
  0x41   :  { %1228 = vmatpush3.msra.mxu1 %v127_v11  ;;  %1194 = vmatprep.subr.mxu0 %v110_v12  ;;  %v124_v23 = vld [vmem:[#allocation5 + $0x150] sm:$0xff]  ;;  %v107_v24 = vld [vmem:[#allocation5 + $0xc8] sm:$0xff]  ;;  %v106_v28 = vld [vmem:[#allocation5 + $0xc0] sm:$0xff] }
  0x42   :  { %1229 = vmatprep.subr.mxu1 %v142_v13  ;;  %1195 = vmatpush3.msra.mxu0 %v94_v14  ;;  %v139_v25 = vld [vmem:[#allocation5 + $0x1c8] sm:$0xff]  ;;  %v138_v29 = vld [vmem:[#allocation5 + $0x1c0] sm:$0xff]  ;;  %v105_v35 = vld [vmem:[#allocation5 + $0xb8] sm:$0xff] }
  0x43   :  { %1230 = vmatpush3.msra.mxu1 %v126_v15  ;;  %1196 = vmatprep.subr.mxu0 %v109_v16  ;;  %v91_v26 = vld [vmem:[#allocation5 + $0x48] sm:$0xff]  ;;  %v90_v33 = vld [vmem:[#allocation5 + $0x40] sm:$0xff]  ;;  %v137_v36 = vld [vmem:[#allocation5 + $0x1b8] sm:$0xff] }
  0x44   :  { %1231 = vmatprep.subr.mxu1 %v141_v17  ;;  %1197 = vmatpush3.msra.mxu0 %v93_v18  ;;  %v123_v27 = vld [vmem:[#allocation5 + $0x148] sm:$0xff]  ;;  %v122_v34 = vld [vmem:[#allocation5 + $0x140] sm:$0xff]  ;;  %v89_v37 = vld [vmem:[#allocation5 + $0x38] sm:$0xff] }
  0x45   :  { %1232 = vmatpush3.msra.mxu1 %v125_v19  ;;  %1198 = vmatprep.subr.mxu0 %v108_v20  ;;  %v121_v38 = vld [vmem:[#allocation5 + $0x138] sm:$0xff]  ;;  %v104_v39 = vld [vmem:[#allocation5 + $0xb0] sm:$0xff]  ;;  %v103_v45 = vld [vmem:[#allocation5 + $0xa8] sm:$0xff] }
  0x46   :  { %1233 = vmatprep.subr.mxu1 %v140_v21  ;;  %1199 = vmatpush3.msra.mxu0 %v92_v22  ;;  %v136_v40 = vld [vmem:[#allocation5 + $0x1b0] sm:$0xff]  ;;  %v135_v46 = vld [vmem:[#allocation5 + $0x1a8] sm:$0xff]  ;;  %v102_v49 = vld [vmem:[#allocation5 + $0xa0] sm:$0xff] }
  0x47   :  { %1234 = vmatpush3.msra.mxu1 %v124_v23  ;;  %1200 = vmatprep.subr.mxu0 %v107_v24  ;;  %v88_v43 = vld [vmem:[#allocation5 + $0x30] sm:$0xff]  ;;  %v87_v47 = vld [vmem:[#allocation5 + $0x28] sm:$0xff]  ;;  %v134_v50 = vld [vmem:[#allocation5 + $0x1a0] sm:$0xff] }
  0x48   :  { %1235 = vmatprep.subr.mxu1 %v139_v25  ;;  %1201 = vmatpush3.msra.mxu0 %v91_v26  ;;  %v120_v44 = vld [vmem:[#allocation5 + $0x130] sm:$0xff]  ;;  %v119_v48 = vld [vmem:[#allocation5 + $0x128] sm:$0xff]  ;;  %v86_v51 = vld [vmem:[#allocation5 + $0x20] sm:$0xff] }
  0x49   :  { %1236 = vmatpush3.msra.mxu1 %v123_v27  ;;  %1202 = vmatprep.subr.mxu0 %v106_v28  ;;  %v118_v52 = vld [vmem:[#allocation5 + $0x120] sm:$0xff]  ;;  %v101_v53 = vld [vmem:[#allocation5 + $0x98] sm:$0xff]  ;;  %v100_v62 = vld [vmem:[#allocation5 + $0x90] sm:$0xff] }
  0x4a   :  { %1237 = vmatprep.subr.mxu1 %v138_v29  ;;  %1203 = vmatpush3.msra.mxu0 %v90_v33  ;;  %v133_v54 = vld [vmem:[#allocation5 + $0x198] sm:$0xff]  ;;  %v1341_v57 = vld [vmem:[#allocation2] ss:$16 sps:$4 sm:$0xff]   ;;  %v1345_v60 = vld [vmem:[#allocation2 + $0x4] ss:$16 sps:$4 sm:$0xff]  }
  0x4b   :  { %1238 = vmatpush3.msra.mxu1 %v122_v34  ;;  %1204 = vmatprep.subr.mxu0 %v105_v35  ;;  %v85_v56 = vld [vmem:[#allocation5 + $0x18] sm:$0xff]  ;;  %v1343_v58 = vld [vmem:[#allocation2 + $0x20] ss:$16 sps:$4 sm:$0xff]   ;;  %v1346_v61 = vld [vmem:[#allocation2 + $0x24] ss:$16 sps:$4 sm:$0xff]   ;;  %v235_v0 = vrot.slane %v1341_v57, %v1538_v55  ;;  %v242_v6 = vrot.slane %v1345_v60, %v1538_v55 }
  0x4c   :  { %1239 = vmatprep.subr.mxu1 %v137_v36  ;;  %1205 = vmatpush3.msra.mxu0 %v89_v37  ;;  %v117_v59 = vld [vmem:[#allocation5 + $0x118] sm:$0xff]  ;;  %v132_v63 = vld [vmem:[#allocation5 + $0x190] sm:$0xff]  ;;  %v249_v1 = vrot.slane %v1343_v58, %v1538_v55  ;;  %v99_v4 = vld [vmem:[#allocation5 + $0x88] sm:$0xff]  ;;  %v256_v7 = vrot.slane %v1346_v61, %v1538_v55 }
  0x4d   :  { %1240 = vmatpush3.msra.mxu1 %v121_v38  ;;  %1206 = vmatprep.subr.mxu0 %v104_v39  ;;  %v84_v2 = vld [vmem:[#allocation5 + $0x10] sm:$0xff]  ;;  %v131_v5 = vld [vmem:[#allocation5 + $0x188] sm:$0xff]  ;;  %v98_v10 = vld [vmem:[#allocation5 + $0x80] sm:$0xff] }
  0x4e   :  { %1241 = vmatprep.subr.mxu1 %v136_v40  ;;  %1207 = vmatpush3.msra.mxu0 %v88_v43  ;;  %v116_v3 = vld [vmem:[#allocation5 + $0x110] sm:$0xff]  ;;  %v83_v8 = vld [vmem:[#allocation5 + $0x8] sm:$0xff]  ;;  %v130_v11 = vld [vmem:[#allocation5 + $0x180] sm:$0xff]  ;;  %v258_v12 = vcombine.high %v235_v0, %v249_v1  ;;  %v257_v14 = vcombine.low %v235_v0, %v249_v1  ;;  %v260_v16 = vcombine.high %v242_v6, %v256_v7 }
  0x4f   :  { %1242 = vmatpush3.msra.mxu1 %v120_v44  ;;  %1208 = vmatprep.subr.mxu0 %v103_v45  ;;  %v115_v9 = vld [vmem:[#allocation5 + $0x108] sm:$0xff]  ;;  %v82_v13 = vld [vmem:[#allocation5] sm:$0xff]  ;;  %v177_v17 = vld [vmem:[#allocation5 + $0x2f8] sm:$0xff]  ;;  %v259_v18 = vcombine.low %v242_v6, %v256_v7 }
  0x50   :  { %1243 = vmatprep.subr.mxu1 %v135_v46  ;;  %1209 = vmatpush3.msra.mxu0 %v87_v47  ;;  %v114_v15 = vld [vmem:[#allocation5 + $0x100] sm:$0xff]  ;;  %v209_v19 = vld [vmem:[#allocation5 + $0x3f8] sm:$0xff]  ;;  %v176_v22 = vld [vmem:[#allocation5 + $0x2f0] sm:$0xff] }
  0x51   :  { %1244 = vmatpush3.msra.mxu1 %v119_v48  ;;  %1210 = vmatprep.subr.mxu0 %v102_v49  ;;  %v161_v20 = vld [vmem:[#allocation5 + $0x278] sm:$0xff]  ;;  %v208_v23 = vld [vmem:[#allocation5 + $0x3f0] sm:$0xff]  ;;  %v175_v26 = vld [vmem:[#allocation5 + $0x2e8] sm:$0xff] }
  0x52   :  { %1245 = vmatprep.subr.mxu1 %v134_v50  ;;  %1211 = vmatpush3.msra.mxu0 %v86_v51  ;;  %v193_v21 = vld [vmem:[#allocation5 + $0x378] sm:$0xff]  ;;  %v160_v24 = vld [vmem:[#allocation5 + $0x270] sm:$0xff]  ;;  %v207_v27 = vld [vmem:[#allocation5 + $0x3e8] sm:$0xff] }
  0x53   :  { %1246 = vmatpush3.msra.mxu1 %v118_v52  ;;  %1212 = vmatprep.subr.mxu0 %v101_v53  ;;  %v192_v25 = vld [vmem:[#allocation5 + $0x370] sm:$0xff]  ;;  %v159_v28 = vld [vmem:[#allocation5 + $0x268] sm:$0xff]  ;;  %v174_v30 = vld [vmem:[#allocation5 + $0x2e0] sm:$0xff] }
  0x54   :  { %1247 = vmatprep.subr.mxu1 %v133_v54  ;;  %1213 = vmatpush3.msra.mxu0 %v85_v56  ;;  %v191_v29 = vld [vmem:[#allocation5 + $0x368] sm:$0xff]  ;;  %v206_v31 = vld [vmem:[#allocation5 + $0x3e0] sm:$0xff]  ;;  %v173_v34 = vld [vmem:[#allocation5 + $0x2d8] sm:$0xff] }
  0x55   :  { %1248 = vmatpush3.msra.mxu1 %v117_v59  ;;  %1214 = vmatprep.subr.mxu0 %v100_v62  ;;  %v158_v32 = vld [vmem:[#allocation5 + $0x260] sm:$0xff]  ;;  %v205_v35 = vld [vmem:[#allocation5 + $0x3d8] sm:$0xff]  ;;  %v172_v38 = vld [vmem:[#allocation5 + $0x2d0] sm:$0xff] }
  0x56   :  { %1249 = vmatprep.subr.mxu1 %v132_v63  ;;  %1215 = vmatpush3.msra.mxu0 %v84_v2  ;;  %v190_v33 = vld [vmem:[#allocation5 + $0x360] sm:$0xff]  ;;  %v157_v36 = vld [vmem:[#allocation5 + $0x258] sm:$0xff]  ;;  %v204_v39 = vld [vmem:[#allocation5 + $0x3d0] sm:$0xff] }
  0x57   :  { %1250 = vmatpush3.msra.mxu1 %v116_v3  ;;  %1216 = vmatprep.subr.mxu0 %v99_v4  ;;  %v189_v37 = vld [vmem:[#allocation5 + $0x358] sm:$0xff]  ;;  %v156_v40 = vld [vmem:[#allocation5 + $0x250] sm:$0xff]  ;;  %v171_v43 = vld [vmem:[#allocation5 + $0x2c8] sm:$0xff] }
  0x58   :  { %1251 = vmatprep.subr.mxu1 %v131_v5  ;;  %1217 = vmatpush3.msra.mxu0 %v83_v8  ;;  %v188_v41 = vld [vmem:[#allocation5 + $0x350] sm:$0xff]  ;;  %v203_v44 = vld [vmem:[#allocation5 + $0x3c8] sm:$0xff]  ;;  %v170_v47 = vld [vmem:[#allocation5 + $0x2c0] sm:$0xff] }
  0x59   :  { %1252 = vmatpush3.msra.mxu1 %v115_v9  ;;  %1218 = vmatprep.subr.mxu0 %v98_v10  ;;  %v155_v45 = vld [vmem:[#allocation5 + $0x248] sm:$0xff]  ;;  %v202_v48 = vld [vmem:[#allocation5 + $0x3c0] sm:$0xff]  ;;  %v169_v51 = vld [vmem:[#allocation5 + $0x2b8] sm:$0xff] }
  0x5a   :  { %1253 = vmatprep.subr.mxu1 %v130_v11  ;;  %1219 = vmatpush3.msra.mxu0 %v82_v13  ;;  %v187_v46 = vld [vmem:[#allocation5 + $0x348] sm:$0xff]  ;;  %v154_v49 = vld [vmem:[#allocation5 + $0x240] sm:$0xff]  ;;  %v201_v52 = vld [vmem:[#allocation5 + $0x3b8] sm:$0xff] }
  0x5b   :  { %369 = vmatprep.mubr.f32.mxu0 %v258_v12  ;;  %1254 = vmatpush3.msra.mxu1 %v114_v15  ;;  %v186_v50 = vld [vmem:[#allocation5 + $0x340] sm:$0xff]  ;;  %v153_v53 = vld [vmem:[#allocation5 + $0x238] sm:$0xff]  ;;  %v168_v56 = vld [vmem:[#allocation5 + $0x2b0] sm:$0xff] }
  0x5c   :  { %370 = vmatmul.mubr.f32.vlgmr.msra.gmra.mxu0 %v257_v14  ;;  %439 = vmatprep.mubr.f32.mxu1 %v260_v16  ;;  %v185_v54 = vld [vmem:[#allocation5 + $0x338] sm:$0xff]  ;;  %v200_v57 = vld [vmem:[#allocation5 + $0x3b0] sm:$0xff]  ;;  %v167_v60 = vld [vmem:[#allocation5 + $0x2a8] sm:$0xff] }
  0x5d   :  { %1258 = vmatprep.subr.mxu0 %v177_v17  ;;  %1293 = vmatprep.subr.mxu1 %v209_v19  ;;  %v152_v58 = vld [vmem:[#allocation5 + $0x230] sm:$0xff]  ;;  %v199_v61 = vld [vmem:[#allocation5 + $0x3a8] sm:$0xff]  ;;  %v166_v0 = vld [vmem:[#allocation5 + $0x2a0] sm:$0xff] }
  0x5e   :  { %440 = vmatmul.mubr.f32.vlgmr.msra.gmra.mxu1 %v259_v18  ;;  %1259 = vmatpush3.msra.mxu0 %v161_v20  ;;  %v184_v59 = vld [vmem:[#allocation5 + $0x330] sm:$0xff]  ;;  %v151_v62 = vld [vmem:[#allocation5 + $0x228] sm:$0xff]  ;;  %v198_v1 = vld [vmem:[#allocation5 + $0x3a0] sm:$0xff] }
  0x5f   :  { %1294 = vmatpush3.msra.mxu1 %v193_v21  ;;  %1260 = vmatprep.subr.mxu0 %v176_v22  ;;  %v183_v63 = vld [vmem:[#allocation5 + $0x328] sm:$0xff]  ;;  %v150_v2 = vld [vmem:[#allocation5 + $0x220] sm:$0xff]  ;;  %v165_v8 = vld [vmem:[#allocation5 + $0x298] sm:$0xff] }
  0x60   :  { %1295 = vmatprep.subr.mxu1 %v208_v23  ;;  %1261 = vmatpush3.msra.mxu0 %v160_v24  ;;  %v1347_v3 = vld [vmem:[#allocation2 + $0x8] ss:$16 sps:$4 sm:$0xff]   ;;  %v182_v5 = vld [vmem:[#allocation5 + $0x320] sm:$0xff]  ;;  %v1351_v6 = vld [vmem:[#allocation2 + $0xc] ss:$16 sps:$4 sm:$0xff]  }
  0x61   :  { %1296 = vmatpush3.msra.mxu1 %v192_v25  ;;  %1262 = vmatprep.subr.mxu0 %v175_v26  ;;  %v1349_v4 = vld [vmem:[#allocation2 + $0x28] ss:$16 sps:$4 sm:$0xff]   ;;  %v1352_v7 = vld [vmem:[#allocation2 + $0x2c] ss:$16 sps:$4 sm:$0xff]   ;;  %v164_v12 = vld [vmem:[#allocation5 + $0x290] sm:$0xff]  ;;  %v271_v14 = vrot.slane %v1347_v3, %v1538_v55  ;;  %v278_v18 = vrot.slane %v1351_v6, %v1538_v55 }
  0x62   :  { %1297 = vmatprep.subr.mxu1 %v207_v27  ;;  %1263 = vmatpush3.msra.mxu0 %v159_v28  ;;  %v197_v9 = vld [vmem:[#allocation5 + $0x398] sm:$0xff]  ;;  %v196_v13 = vld [vmem:[#allocation5 + $0x390] sm:$0xff]  ;;  %v285_v15 = vrot.slane %v1349_v4, %v1538_v55  ;;  %v292_v19 = vrot.slane %v1352_v7, %v1538_v55  ;;  %v163_v20 = vld [vmem:[#allocation5 + $0x288] sm:$0xff] }
  0x63   :  { %1298 = vmatpush3.msra.mxu1 %v191_v29  ;;  %1264 = vmatprep.subr.mxu0 %v174_v30  ;;  %v149_v10 = vld [vmem:[#allocation5 + $0x218] sm:$0xff]  ;;  %v148_v16 = vld [vmem:[#allocation5 + $0x210] sm:$0xff]  ;;  %v195_v21 = vld [vmem:[#allocation5 + $0x388] sm:$0xff] }
  0x64   :  { %1299 = vmatprep.subr.mxu1 %v206_v31  ;;  %1265 = vmatpush3.msra.mxu0 %v158_v32  ;;  %v181_v11 = vld [vmem:[#allocation5 + $0x318] sm:$0xff]  ;;  %v180_v17 = vld [vmem:[#allocation5 + $0x310] sm:$0xff]  ;;  %v147_v22 = vld [vmem:[#allocation5 + $0x208] sm:$0xff]  ;;  %v294_v26 = vcombine.high %v271_v14, %v285_v15  ;;  %v296_v28 = vcombine.high %v278_v18, %v292_v19  ;;  %v293_v30 = vcombine.low %v271_v14, %v285_v15 }
  0x65   :  { %1300 = vmatpush3.msra.mxu1 %v190_v33  ;;  %1266 = vmatprep.subr.mxu0 %v173_v34  ;;  %v179_v23 = vld [vmem:[#allocation5 + $0x308] sm:$0xff]  ;;  %v162_v24 = vld [vmem:[#allocation5 + $0x280] sm:$0xff]  ;;  %v295_v31 = vcombine.low %v278_v18, %v292_v19  ;;  %v709_v33 = vld [vmem:[#allocation7 + $0x3d8] sm:$0xff] }
  0x66   :  { %1301 = vmatprep.subr.mxu1 %v205_v35  ;;  %1267 = vmatpush3.msra.mxu0 %v157_v36  ;;  %v194_v25 = vld [vmem:[#allocation5 + $0x380] sm:$0xff]  ;;  %v707_v32 = vld [vmem:[#allocation7 + $0x3c8] sm:$0xff]  ;;  %v708_v35 = vld [vmem:[#allocation7 + $0x3d0] sm:$0xff] }
  0x67   :  { %1302 = vmatpush3.msra.mxu1 %v189_v37  ;;  %1268 = vmatprep.subr.mxu0 %v172_v38  ;;  %v146_v27 = vld [vmem:[#allocation5 + $0x200] sm:$0xff]  ;;  %v699_v36 = vld [vmem:[#allocation7 + $0x388] sm:$0xff]  ;;  %v701_v37 = vld [vmem:[#allocation7 + $0x398] sm:$0xff] }
  0x68   :  { %1303 = vmatprep.subr.mxu1 %v204_v39  ;;  %1269 = vmatpush3.msra.mxu0 %v156_v40  ;;  %v178_v29 = vld [vmem:[#allocation5 + $0x300] sm:$0xff]  ;;  %v700_v39 = vld [vmem:[#allocation7 + $0x390] sm:$0xff]  ;;  %v691_v40 = vld [vmem:[#allocation7 + $0x348] sm:$0xff] }
  0x69   :  { %1304 = vmatpush3.msra.mxu1 %v188_v41  ;;  %1270 = vmatprep.subr.mxu0 %v171_v43  ;;  %v706_v34 = vld [vmem:[#allocation7 + $0x3c0] sm:$0xff]  ;;  %v693_v41 = vld [vmem:[#allocation7 + $0x358] sm:$0xff]  ;;  %v635_v6 = vld [vmem:[#allocation7 + $0x188] sm:$0xff] }
  0x6a   :  { %1305 = vmatprep.subr.mxu1 %v203_v44  ;;  %1271 = vmatpush3.msra.mxu0 %v155_v45  ;;  %v698_v38 = vld [vmem:[#allocation7 + $0x380] sm:$0xff]  ;;  %v692_v44 = vld [vmem:[#allocation7 + $0x350] sm:$0xff]  ;;  %v683_v45 = vld [vmem:[#allocation7 + $0x308] sm:$0xff] }
  0x6b   :  { %1306 = vmatpush3.msra.mxu1 %v187_v46  ;;  %1272 = vmatprep.subr.mxu0 %v170_v47  ;;  %v690_v43 = vld [vmem:[#allocation7 + $0x340] sm:$0xff]  ;;  %v685_v46 = vld [vmem:[#allocation7 + $0x318] sm:$0xff]  ;;  %v619_v14 = vld [vmem:[#allocation7 + $0x108] sm:$0xff] }
  0x6c   :  { %1307 = vmatprep.subr.mxu1 %v202_v48  ;;  %1273 = vmatpush3.msra.mxu0 %v154_v49  ;;  %v682_v47 = vld [vmem:[#allocation7 + $0x300] sm:$0xff]  ;;  %v684_v48 = vld [vmem:[#allocation7 + $0x310] sm:$0xff]  ;;  %v675_v49 = vld [vmem:[#allocation7 + $0x2c8] sm:$0xff] }
  0x6d   :  { %1308 = vmatpush3.msra.mxu1 %v186_v50  ;;  %1274 = vmatprep.subr.mxu0 %v169_v51  ;;  %v677_v50 = vld [vmem:[#allocation7 + $0x2d8] sm:$0xff]  ;;  %v674_v51 = vld [vmem:[#allocation7 + $0x2c0] sm:$0xff]  ;;  %v611_v18 = vld [vmem:[#allocation7 + $0xc8] sm:$0xff] }
  0x6e   :  { %1309 = vmatprep.subr.mxu1 %v201_v52  ;;  %1275 = vmatpush3.msra.mxu0 %v153_v53  ;;  %v676_v52 = vld [vmem:[#allocation7 + $0x2d0] sm:$0xff]  ;;  %v667_v53 = vld [vmem:[#allocation7 + $0x288] sm:$0xff]  ;;  %v645_v3 = vld [vmem:[#allocation7 + $0x1d8] sm:$0xff] }
  0x6f   :  { %1310 = vmatpush3.msra.mxu1 %v185_v54  ;;  %1276 = vmatprep.subr.mxu0 %v168_v56  ;;  %v669_v54 = vld [vmem:[#allocation7 + $0x298] sm:$0xff]  ;;  %v666_v56 = vld [vmem:[#allocation7 + $0x280] sm:$0xff] }
  0x70   :  { %1311 = vmatprep.subr.mxu1 %v200_v57  ;;  %1277 = vmatpush3.msra.mxu0 %v152_v58  ;;  %v668_v57 = vld [vmem:[#allocation7 + $0x290] sm:$0xff]  ;;  %v659_v58 = vld [vmem:[#allocation7 + $0x248] sm:$0xff]  ;;  %v642_v4 = vld [vmem:[#allocation7 + $0x1c0] sm:$0xff] }
  0x71   :  { %1312 = vmatpush3.msra.mxu1 %v184_v59  ;;  %1278 = vmatprep.subr.mxu0 %v167_v60  ;;  %v661_v59 = vld [vmem:[#allocation7 + $0x258] sm:$0xff]  ;;  %v658_v60 = vld [vmem:[#allocation7 + $0x240] sm:$0xff] }
  0x72   :  { %1313 = vmatprep.subr.mxu1 %v199_v61  ;;  %1279 = vmatpush3.msra.mxu0 %v151_v62  ;;  %v660_v61 = vld [vmem:[#allocation7 + $0x250] sm:$0xff]  ;;  %v651_v62 = vld [vmem:[#allocation7 + $0x208] sm:$0xff]  ;;  %v637_v7 = vld [vmem:[#allocation7 + $0x198] sm:$0xff] }
  0x73   :  { %1314 = vmatpush3.msra.mxu1 %v183_v63  ;;  %1280 = vmatprep.subr.mxu0 %v166_v0  ;;  %v653_v63 = vld [vmem:[#allocation7 + $0x218] sm:$0xff]  ;;  %v650_v0 = vld [vmem:[#allocation7 + $0x200] sm:$0xff] }
  0x74   :  { %1315 = vmatprep.subr.mxu1 %v198_v1  ;;  %1281 = vmatpush3.msra.mxu0 %v150_v2  ;;  %v652_v1 = vld [vmem:[#allocation7 + $0x210] sm:$0xff]  ;;  %v643_v2 = vld [vmem:[#allocation7 + $0x1c8] sm:$0xff]  ;;  %v621_v15 = vld [vmem:[#allocation7 + $0x118] sm:$0xff] }
  0x75   :  { %1316 = vmatpush3.msra.mxu1 %v182_v5  ;;  %1282 = vmatprep.subr.mxu0 %v165_v8  ;;  %v644_v5 = vld [vmem:[#allocation7 + $0x1d0] sm:$0xff]  ;;  %v634_v8 = vld [vmem:[#allocation7 + $0x180] sm:$0xff]  ;;  %v613_v19 = vld [vmem:[#allocation7 + $0xd8] sm:$0xff] }
  0x76   :  { %1317 = vmatprep.subr.mxu1 %v197_v9  ;;  %1283 = vmatpush3.msra.mxu0 %v149_v10  ;;  %v636_v9 = vld [vmem:[#allocation7 + $0x190] sm:$0xff]  ;;  %v627_v10 = vld [vmem:[#allocation7 + $0x148] sm:$0xff] }
  0x77   :  { %1318 = vmatpush3.msra.mxu1 %v181_v11  ;;  %1284 = vmatprep.subr.mxu0 %v164_v12  ;;  %v629_v11 = vld [vmem:[#allocation7 + $0x158] sm:$0xff]  ;;  %v626_v12 = vld [vmem:[#allocation7 + $0x140] sm:$0xff] }
  0x78   :  { %1319 = vmatprep.subr.mxu1 %v196_v13  ;;  %1285 = vmatpush3.msra.mxu0 %v148_v16  ;;  %v628_v13 = vld [vmem:[#allocation7 + $0x150] sm:$0xff]  ;;  %v618_v16 = vld [vmem:[#allocation7 + $0x100] sm:$0xff] }
  0x79   :  { %1320 = vmatpush3.msra.mxu1 %v180_v17  ;;  %1286 = vmatprep.subr.mxu0 %v163_v20  ;;  %v620_v17 = vld [vmem:[#allocation7 + $0x110] sm:$0xff]  ;;  %v610_v20 = vld [vmem:[#allocation7 + $0xc0] sm:$0xff] }
  0x7a   :  { %1321 = vmatprep.subr.mxu1 %v195_v21  ;;  %1287 = vmatpush3.msra.mxu0 %v147_v22  ;;  %v612_v21 = vld [vmem:[#allocation7 + $0xd0] sm:$0xff]  ;;  %v603_v22 = vld [vmem:[#allocation7 + $0x88] sm:$0xff] }
  0x7b   :  { %1322 = vmatpush3.msra.mxu1 %v179_v23  ;;  %1288 = vmatprep.subr.mxu0 %v162_v24  ;;  %v605_v23 = vld [vmem:[#allocation7 + $0x98] sm:$0xff]  ;;  %v602_v24 = vld [vmem:[#allocation7 + $0x80] sm:$0xff] }
  0x7c   :  { %1323 = vmatprep.subr.mxu1 %v194_v25  ;;  %1289 = vmatpush3.msra.mxu0 %v146_v27  ;;  %v604_v25 = vld [vmem:[#allocation7 + $0x90] sm:$0xff]  ;;  %v597_v27 = vld [vmem:[#allocation7 + $0x58] sm:$0xff] }
  0x7d   :  { %509 = vmatprep.mubr.f32.mxu0 %v294_v26  ;;  %1324 = vmatpush3.msra.mxu1 %v178_v29  ;;  %v595_v26 = vld [vmem:[#allocation7 + $0x48] sm:$0xff]  ;;  %v596_v29 = vld [vmem:[#allocation7 + $0x50] sm:$0xff] }
  0x7e   :  { %579 = vmatprep.mubr.f32.mxu1 %v296_v28  ;;  %510 = vmatmul.mubr.f32.vlgmr.msra.gmra.mxu0 %v293_v30  ;;  %v594_v28 = vld [vmem:[#allocation7 + $0x40] sm:$0xff]  ;;  %v587_v30 = vld [vmem:[#allocation7 + $0x8] sm:$0xff] }
  0x7f   :  { %580 = vmatmul.mubr.f32.vlgmr.msra.gmra.mxu1 %v295_v31  ;;  %756 = vmatprep.subr.mxu0 %v707_v32  ;;  %v589_v31 = vld [vmem:[#allocation7 + $0x18] sm:$0xff]  ;;  %v586_v32 = vld [vmem:[#allocation7] sm:$0xff] }
  0x80   :  { %827 = vmatprep.subr.mxu1 %v709_v33  ;;  %757 = vmatpush1.msra.mxu0 %v706_v34  ;;  %v588_v33 = vld [vmem:[#allocation7 + $0x10] sm:$0xff]  ;;  %v711_v34 = vld [vmem:[#allocation7 + $0x3e8] sm:$0xff] }
  0x81   :  { %828 = vmatpush1.msra.mxu1 %v708_v35  ;;  %758 = vmatprep.subr.mxu0 %v699_v36  ;;  %v713_v35 = vld [vmem:[#allocation7 + $0x3f8] sm:$0xff]  ;;  %v1488_v36 = vmov 0.0  }
  0x82   :  { %829 = vmatprep.subr.mxu1 %v701_v37  ;;  %759 = vmatpush1.msra.mxu0 %v698_v38 }
  0x83   :  { %830 = vmatpush1.msra.mxu1 %v700_v39  ;;  %760 = vmatprep.subr.mxu0 %v691_v40 }
  0x84   :  { %831 = vmatprep.subr.mxu1 %v693_v41  ;;  %761 = vmatpush1.msra.mxu0 %v690_v43  ;;  %v1187_v41 = vld [vmem:[%s1585_s2] ss:$0 sm:$0xff] }
  0x85   :  { %832 = vmatpush1.msra.mxu1 %v692_v44  ;;  %762 = vmatprep.subr.mxu0 %v683_v45 }
  0x86   :  { %833 = vmatprep.subr.mxu1 %v685_v46  ;;  %763 = vmatpush1.msra.mxu0 %v682_v47 }
  0x87   :  { %834 = vmatpush1.msra.mxu1 %v684_v48  ;;  %764 = vmatprep.subr.mxu0 %v675_v49 }
  0x88   :  { %835 = vmatprep.subr.mxu1 %v677_v50  ;;  %765 = vmatpush1.msra.mxu0 %v674_v51 }
  0x89   :  { %836 = vmatpush1.msra.mxu1 %v676_v52  ;;  %766 = vmatprep.subr.mxu0 %v667_v53 }
  0x8a   :  { %837 = vmatprep.subr.mxu1 %v669_v54  ;;  %767 = vmatpush1.msra.mxu0 %v666_v56 }
  0x8b   :  { %838 = vmatpush1.msra.mxu1 %v668_v57  ;;  %768 = vmatprep.subr.mxu0 %v659_v58  ;;  %v710_v57 = vld [vmem:[#allocation7 + $0x3e0] sm:$0xff]  ;;  %v712_v58 = vld [vmem:[#allocation7 + $0x3f0] sm:$0xff] }
  0x8c   :  { %839 = vmatprep.subr.mxu1 %v661_v59  ;;  %769 = vmatpush1.msra.mxu0 %v658_v60  ;;  %v703_v59 = vld [vmem:[#allocation7 + $0x3a8] sm:$0xff]  ;;  %v705_v60 = vld [vmem:[#allocation7 + $0x3b8] sm:$0xff] }
  0x8d   :  { %840 = vmatpush1.msra.mxu1 %v660_v61  ;;  %770 = vmatprep.subr.mxu0 %v651_v62  ;;  %v702_v61 = vld [vmem:[#allocation7 + $0x3a0] sm:$0xff]  ;;  %v704_v62 = vld [vmem:[#allocation7 + $0x3b0] sm:$0xff] }
  0x8e   :  { %841 = vmatprep.subr.mxu1 %v653_v63  ;;  %771 = vmatpush1.msra.mxu0 %v650_v0  ;;  %v695_v63 = vld [vmem:[#allocation7 + $0x368] sm:$0xff]  ;;  %v697_v0 = vld [vmem:[#allocation7 + $0x378] sm:$0xff] }
  0x8f   :  { %842 = vmatpush1.msra.mxu1 %v652_v1  ;;  %772 = vmatprep.subr.mxu0 %v643_v2  ;;  %v694_v1 = vld [vmem:[#allocation7 + $0x360] sm:$0xff]  ;;  %v696_v2 = vld [vmem:[#allocation7 + $0x370] sm:$0xff] }
  0x90   :  { %843 = vmatprep.subr.mxu1 %v645_v3  ;;  %773 = vmatpush1.msra.mxu0 %v642_v4  ;;  %v687_v3 = vld [vmem:[#allocation7 + $0x328] sm:$0xff]  ;;  %v689_v4 = vld [vmem:[#allocation7 + $0x338] sm:$0xff] }
  0x91   :  { %844 = vmatpush1.msra.mxu1 %v644_v5  ;;  %774 = vmatprep.subr.mxu0 %v635_v6  ;;  %v686_v5 = vld [vmem:[#allocation7 + $0x320] sm:$0xff]  ;;  %v688_v6 = vld [vmem:[#allocation7 + $0x330] sm:$0xff] }
  0x92   :  { %845 = vmatprep.subr.mxu1 %v637_v7  ;;  %775 = vmatpush1.msra.mxu0 %v634_v8  ;;  %v679_v7 = vld [vmem:[#allocation7 + $0x2e8] sm:$0xff]  ;;  %v681_v8 = vld [vmem:[#allocation7 + $0x2f8] sm:$0xff] }
  0x93   :  { %846 = vmatpush1.msra.mxu1 %v636_v9  ;;  %776 = vmatprep.subr.mxu0 %v627_v10  ;;  %v678_v9 = vld [vmem:[#allocation7 + $0x2e0] sm:$0xff]  ;;  %v680_v10 = vld [vmem:[#allocation7 + $0x2f0] sm:$0xff] }
  0x94   :  { %847 = vmatprep.subr.mxu1 %v629_v11  ;;  %777 = vmatpush1.msra.mxu0 %v626_v12  ;;  %v671_v11 = vld [vmem:[#allocation7 + $0x2a8] sm:$0xff]  ;;  %v673_v12 = vld [vmem:[#allocation7 + $0x2b8] sm:$0xff] }
  0x95   :  { %848 = vmatpush1.msra.mxu1 %v628_v13  ;;  %778 = vmatprep.subr.mxu0 %v619_v14  ;;  %v670_v13 = vld [vmem:[#allocation7 + $0x2a0] sm:$0xff]  ;;  %v672_v14 = vld [vmem:[#allocation7 + $0x2b0] sm:$0xff] }
  0x96   :  { %849 = vmatprep.subr.mxu1 %v621_v15  ;;  %779 = vmatpush1.msra.mxu0 %v618_v16  ;;  %v663_v15 = vld [vmem:[#allocation7 + $0x268] sm:$0xff]  ;;  %v665_v16 = vld [vmem:[#allocation7 + $0x278] sm:$0xff] }
  0x97   :  { %850 = vmatpush1.msra.mxu1 %v620_v17  ;;  %780 = vmatprep.subr.mxu0 %v611_v18  ;;  %v662_v17 = vld [vmem:[#allocation7 + $0x260] sm:$0xff]  ;;  %v664_v18 = vld [vmem:[#allocation7 + $0x270] sm:$0xff] }
  0x98   :  { %851 = vmatprep.subr.mxu1 %v613_v19  ;;  %781 = vmatpush1.msra.mxu0 %v610_v20  ;;  %v655_v19 = vld [vmem:[#allocation7 + $0x228] sm:$0xff]  ;;  %v657_v20 = vld [vmem:[#allocation7 + $0x238] sm:$0xff] }
  0x99   :  { %852 = vmatpush1.msra.mxu1 %v612_v21  ;;  %782 = vmatprep.subr.mxu0 %v603_v22  ;;  %v654_v21 = vld [vmem:[#allocation7 + $0x220] sm:$0xff]  ;;  %v656_v22 = vld [vmem:[#allocation7 + $0x230] sm:$0xff] }
  0x9a   :  { %853 = vmatprep.subr.mxu1 %v605_v23  ;;  %783 = vmatpush1.msra.mxu0 %v602_v24  ;;  %v647_v23 = vld [vmem:[#allocation7 + $0x1e8] sm:$0xff]  ;;  %v649_v24 = vld [vmem:[#allocation7 + $0x1f8] sm:$0xff] }
  0x9b   :  { %854 = vmatpush1.msra.mxu1 %v604_v25  ;;  %784 = vmatprep.subr.mxu0 %v595_v26  ;;  %v646_v25 = vld [vmem:[#allocation7 + $0x1e0] sm:$0xff]  ;;  %v648_v26 = vld [vmem:[#allocation7 + $0x1f0] sm:$0xff] }
  0x9c   :  { %855 = vmatprep.subr.mxu1 %v597_v27  ;;  %785 = vmatpush1.msra.mxu0 %v594_v28  ;;  %v639_v27 = vld [vmem:[#allocation7 + $0x1a8] sm:$0xff]  ;;  %v641_v28 = vld [vmem:[#allocation7 + $0x1b8] sm:$0xff] }
  0x9d   :  { %856 = vmatpush1.msra.mxu1 %v596_v29  ;;  %786 = vmatprep.subr.mxu0 %v587_v30  ;;  %v638_v29 = vld [vmem:[#allocation7 + $0x1a0] sm:$0xff]  ;;  %v640_v30 = vld [vmem:[#allocation7 + $0x1b0] sm:$0xff] }
  0x9e   :  { %857 = vmatprep.subr.mxu1 %v589_v31  ;;  %787 = vmatpush1.msra.mxu0 %v586_v32  ;;  %v631_v31 = vld [vmem:[#allocation7 + $0x168] sm:$0xff]  ;;  %v633_v32 = vld [vmem:[#allocation7 + $0x178] sm:$0xff] }
  0x9f   :  { %858 = vmatpush1.msra.mxu1 %v588_v33  ;;  %820 = vmatprep.mubr.f32.mxu0 %v1488_v36  ;;  %v630_v33 = vld [vmem:[#allocation7 + $0x160] sm:$0xff] }
  0xa0   :  { %891 = vmatprep.mubr.f32.mxu1 %v1488_v36  ;;  %898 = vmatprep.subr.mxu0 %v711_v34  ;;  %v632_v34 = vld [vmem:[#allocation7 + $0x170] sm:$0xff] }
  0xa1   :  { %969 = vmatprep.subr.mxu1 %v713_v35  ;;  %v623_v35 = vld [vmem:[#allocation7 + $0x128] sm:$0xff] }
 0x11c   :  { %v1220_v37 = vpop.f32.mrf.mxu0 }
 0x11e   :  { %v1255_v38 = vpop.f32.mrf.mxu1  ;;  %v1221_v39 = vpop.f32.mrf.mxu0 }
 0x11f   :  { %v1222_v40 = vadd.f32 %v1221_v39, %v1220_v37  ;;  %v625_v37 = vld [vmem:[#allocation7 + $0x138] sm:$0xff]  ;;  %v624_v39 = vld [vmem:[#allocation7 + $0x130] sm:$0xff] }
 0x120   :  { %v1256_v43 = vpop.f32.mrf.mxu1 }
 0x121   :  { %v372_v44 = vadd.f32 %v1222_v40, %v1187_v41  ;;  %v1257_v45 = vadd.f32 %v1256_v43, %v1255_v38  ;;  %v622_v38 = vld [vmem:[#allocation7 + $0x120] sm:$0xff]  ;;  %v615_v40 = vld [vmem:[#allocation7 + $0xe8] sm:$0xff]  ;;  %v617_v41 = vld [vmem:[#allocation7 + $0xf8] sm:$0xff] }
 0x122   :  { %v614_v43 = vld [vmem:[#allocation7 + $0xe0] sm:$0xff] }
 0x123   :  { %v442_v50 = vadd.f32 %v1257_v45, %v372_v44  ;;  %v616_v44 = vld [vmem:[#allocation7 + $0xf0] sm:$0xff]  ;;  %v607_v45 = vld [vmem:[#allocation7 + $0xa8] sm:$0xff] }
 0x13e   :  { %v1290_v46 = vpop.f32.mrf.mxu0 }
 0x13f   :  { %v1325_v47 = vpop.f32.mrf.mxu1 }
 0x140   :  { %v1291_v48 = vpop.f32.mrf.mxu0 }
 0x141   :  { %v1326_v49 = vpop.f32.mrf.mxu1  ;;  %v1292_v51 = vadd.f32 %v1291_v48, %v1290_v46  ;;  %v609_v46 = vld [vmem:[#allocation7 + $0xb8] sm:$0xff]  ;;  %v608_v48 = vld [vmem:[#allocation7 + $0xb0] sm:$0xff] }
 0x142   :  { %v1327_v53 = vadd.f32 %v1326_v49, %v1325_v47  ;;  %v606_v47 = vld [vmem:[#allocation7 + $0xa0] sm:$0xff]  ;;  %v599_v49 = vld [vmem:[#allocation7 + $0x68] sm:$0xff] }
 0x143   :  { %v512_v52 = vadd.f32 %v1292_v51, %v442_v50  ;;  %v601_v50 = vld [vmem:[#allocation7 + $0x78] sm:$0xff]  ;;  %v598_v51 = vld [vmem:[#allocation7 + $0x60] sm:$0xff] }
 0x145   :  { %v582_v54 = vadd.f32 %v1327_v53, %v512_v52  ;;  %v600_v52 = vld [vmem:[#allocation7 + $0x70] sm:$0xff]  ;;  %v591_v53 = vld [vmem:[#allocation7 + $0x28] sm:$0xff] }
 0x147   :  { %v1553_v56 = vmax.f32 %v582_v54, 0.0  ;;  %v593_v54 = vld [vmem:[#allocation7 + $0x38] sm:$0xff] }
 0x149   :  { %821 = vmatmul.mubr.f32.vlgmr.msra.gmra.mxu0 %v1553_v56  ;;  %892 = vmatmul.mubr.f32.vlgmr.msra.gmra.mxu1 %v1553_v56 }
 0x14a   :  { %899 = vmatpush1.msra.mxu0 %v710_v57  ;;  %970 = vmatpush1.msra.mxu1 %v712_v58  ;;  %v590_v57 = vld [vmem:[#allocation7 + $0x20] sm:$0xff]  ;;  %v592_v58 = vld [vmem:[#allocation7 + $0x30] sm:$0xff] }
 0x14b   :  { %900 = vmatprep.subr.mxu0 %v703_v59  ;;  %971 = vmatprep.subr.mxu1 %v705_v60  ;;  %v718_v59 = vsub.s32 0, %v1535_v42  ;;  %v726_v60 = vsub.s32 2, %v1535_v42 }
 0x14c   :  { %901 = vmatpush1.msra.mxu0 %v702_v61  ;;  %972 = vmatpush1.msra.mxu1 %v704_v62  ;;  %v714_v61 = vld [vmem:[#allocation8] sm:$0xff]  ;;  %v722_v62 = vsub.s32 1, %v1535_v42 }
 0x14d   :  { %902 = vmatprep.subr.mxu0 %v695_v63  ;;  %973 = vmatprep.subr.mxu1 %v697_v0  ;;  %v730_v63 = vsub.s32 3, %v1535_v42  ;;  %v719_v0 = vrot.slane %v714_v61, %v718_v59 }
 0x14e   :  { %903 = vmatpush1.msra.mxu0 %v694_v1  ;;  %974 = vmatpush1.msra.mxu1 %v696_v2  ;;  %v727_v1 = vrot.slane %v714_v61, %v726_v60  ;;  %v723_v2 = vrot.slane %v714_v61, %v722_v62 }
 0x14f   :  { %904 = vmatprep.subr.mxu0 %v687_v3  ;;  %975 = vmatprep.subr.mxu1 %v689_v4  ;;  %v731_v3 = vrot.slane %v714_v61, %v730_v63 }
 0x150   :  { %905 = vmatpush1.msra.mxu0 %v686_v5  ;;  %976 = vmatpush1.msra.mxu1 %v688_v6 }
 0x151   :  { %906 = vmatprep.subr.mxu0 %v679_v7  ;;  %977 = vmatprep.subr.mxu1 %v681_v8 }
 0x152   :  { %907 = vmatpush1.msra.mxu0 %v678_v9  ;;  %978 = vmatpush1.msra.mxu1 %v680_v10 }
 0x153   :  { %908 = vmatprep.subr.mxu0 %v671_v11  ;;  %979 = vmatprep.subr.mxu1 %v673_v12 }
 0x154   :  { %909 = vmatpush1.msra.mxu0 %v670_v13  ;;  %980 = vmatpush1.msra.mxu1 %v672_v14 }
 0x155   :  { %910 = vmatprep.subr.mxu0 %v663_v15  ;;  %981 = vmatprep.subr.mxu1 %v665_v16 }
 0x156   :  { %911 = vmatpush1.msra.mxu0 %v662_v17  ;;  %982 = vmatpush1.msra.mxu1 %v664_v18 }
 0x157   :  { %912 = vmatprep.subr.mxu0 %v655_v19  ;;  %983 = vmatprep.subr.mxu1 %v657_v20 }
 0x158   :  { %913 = vmatpush1.msra.mxu0 %v654_v21  ;;  %984 = vmatpush1.msra.mxu1 %v656_v22 }
 0x159   :  { %914 = vmatprep.subr.mxu0 %v647_v23  ;;  %985 = vmatprep.subr.mxu1 %v649_v24 }
 0x15a   :  { %915 = vmatpush1.msra.mxu0 %v646_v25  ;;  %986 = vmatpush1.msra.mxu1 %v648_v26 }
 0x15b   :  { %916 = vmatprep.subr.mxu0 %v639_v27  ;;  %987 = vmatprep.subr.mxu1 %v641_v28  ;;  %v734_v28 = vsub.s32 4, %v1535_v42 }
 0x15c   :  { %917 = vmatpush1.msra.mxu0 %v638_v29  ;;  %988 = vmatpush1.msra.mxu1 %v640_v30  ;;  %v742_v29 = vsub.s32 6, %v1535_v42 }
 0x15d   :  { %918 = vmatprep.subr.mxu0 %v631_v31  ;;  %989 = vmatprep.subr.mxu1 %v633_v32 }
 0x15e   :  { %919 = vmatpush1.msra.mxu0 %v630_v33  ;;  %990 = vmatpush1.msra.mxu1 %v632_v34 }
 0x15f   :  { %920 = vmatprep.subr.mxu0 %v623_v35  ;;  %991 = vmatprep.subr.mxu1 %v625_v37  ;;  %v738_v37 = vsub.s32 5, %v1535_v42 }
 0x160   :  { %921 = vmatpush1.msra.mxu0 %v622_v38  ;;  %992 = vmatpush1.msra.mxu1 %v624_v39  ;;  %v746_v38 = vsub.s32 7, %v1535_v42  ;;  %v735_v39 = vrot.slane %v714_v61, %v734_v28 }
 0x161   :  { %922 = vmatprep.subr.mxu0 %v615_v40  ;;  %993 = vmatprep.subr.mxu1 %v617_v41  ;;  %v743_v40 = vrot.slane %v714_v61, %v742_v29 }
 0x162   :  { %923 = vmatpush1.msra.mxu0 %v614_v43  ;;  %994 = vmatpush1.msra.mxu1 %v616_v44 }
 0x163   :  { %924 = vmatprep.subr.mxu0 %v607_v45  ;;  %995 = vmatprep.subr.mxu1 %v609_v46  ;;  %v739_v46 = vrot.slane %v714_v61, %v738_v37 }
 0x164   :  { %925 = vmatpush1.msra.mxu0 %v606_v47  ;;  %996 = vmatpush1.msra.mxu1 %v608_v48  ;;  %v747_v47 = vrot.slane %v714_v61, %v746_v38 }
 0x165   :  { %926 = vmatprep.subr.mxu0 %v599_v49  ;;  %997 = vmatprep.subr.mxu1 %v601_v50 }
 0x166   :  { %927 = vmatpush1.msra.mxu0 %v598_v51  ;;  %998 = vmatpush1.msra.mxu1 %v600_v52 }
 0x167   :  { %928 = vmatprep.subr.mxu0 %v591_v53  ;;  %999 = vmatprep.subr.mxu1 %v593_v54 }
 0x168   :  { %929 = vmatpush1.msra.mxu0 %v590_v57  ;;  %962 = vmatprep.mubr.f32.mxu0 %v1488_v36 }
 0x169   :  { %1000 = vmatpush1.msra.mxu1 %v592_v58  ;;  %1033 = vmatprep.mubr.f32.mxu1 %v1488_v36 }
 0x16a   :  { %963 = vmatmul.mubr.f32.vlgmr.msra.gmra.mxu0 %v1553_v56  ;;  %1034 = vmatmul.mubr.f32.vlgmr.msra.gmra.mxu1 %v1553_v56 }
 0x209   :  { %v822_v4 = vpop.f32.mrf.mxu0  ;;  %v893_v5 = vpop.f32.mrf.mxu1 }
 0x20a   :  { %v823_v36 = vadd.f32 %v822_v4, %v719_v0  ;;  %v894_v6 = vadd.f32 %v893_v5, %v727_v1 }
 0x20b   :  { %v824_v7 = vpop.f32.mrf.mxu0  ;;  %v895_v8 = vpop.f32.mrf.mxu1 }
 0x20c   :  { %v1040_v56 = vmul.f32 0.5, %v823_v36  ;;  %v1042_v9 = vmul.f32 0.5, %v894_v6  ;;  %v825_v10 = vadd.f32 %v824_v7, %v723_v2  ;;  %v896_v11 = vadd.f32 %v895_v8, %v731_v3 }
 0x20e   :  { %1353 = vtanh.f32 %v1040_v56  ;;  %v1041_v12 = vmul.f32 0.5, %v825_v10  ;;  %v1043_v13 = vmul.f32 0.5, %v896_v11 }
 0x20f   :  { %1355 = vtanh.f32 %v1042_v9 }
 0x210   :  { %1357 = vtanh.f32 %v1041_v12 }
 0x211   :  { %1359 = vtanh.f32 %v1043_v13 }
 0x21b   :  { %v1354_v14 = vpop.eup %1353 }
 0x21c   :  { %v1356_v15 = vpop.eup %1355  ;;  %v1056_v16 = vadd.f32 1.0, %v1354_v14 }
 0x21d   :  { %v1358_v17 = vpop.eup %1357  ;;  %v1058_v18 = vadd.f32 1.0, %v1356_v15 }
 0x21e   :  { %v1360_v19 = vpop.eup %1359  ;;  %v1057_v20 = vadd.f32 1.0, %v1358_v17  ;;  %v1064_v22 = vmul.f32 0.5, %v1056_v16 }
 0x21f   :  { %v1059_v21 = vadd.f32 1.0, %v1360_v19  ;;  %v1066_v24 = vmul.f32 0.5, %v1058_v18 }
 0x220   :  { %v1065_v23 = vmul.f32 0.5, %v1057_v20 }
 0x221   :  { %v1067_v25 = vmul.f32 0.5, %v1059_v21 }
 0x222   :  { %v1080_v26 = vcombine.low %v1064_v22, %v1065_v23  ;;  %v1081_v27 = vcombine.high %v1064_v22, %v1065_v23 }
 0x223   :  { %v1082_v30 = vcombine.low %v1066_v24, %v1067_v25  ;;  %v1083_v31 = vcombine.high %v1066_v24, %v1067_v25 }
 0x224   :  { %v1090_v32 = vrot.slane %v1080_v26, %v1538_v55  ;;  %v1097_v33 = vrot.slane %v1081_v27, %v1538_v55 }
 0x225   :  { %v1104_v34 = vrot.slane %v1082_v30, %v1538_v55  ;;  %v1111_v35 = vrot.slane %v1083_v31, %v1538_v55 }
 0x227   :  { %v1112_v41 = vcombine.low %v1090_v32, %v1104_v34  ;;  %v1113_v43 = vcombine.high %v1090_v32, %v1104_v34  ;;  %v1114_v44 = vcombine.low %v1097_v33, %v1111_v35  ;;  %v1115_v45 = vcombine.high %v1097_v33, %v1111_v35 }
 0x229   :  { %1160 = vst [vmem:[#allocation10] sm:$0xff] %v1112_v41  ;;  %1162 = vst [vmem:[#allocation10 + $0x10] sm:$0xff] %v1113_v43 }
 0x22a   :  { %1164 = vst [vmem:[#allocation10 + $0x20] sm:$0xff] %v1114_v44  ;;  %1166 = vst [vmem:[#allocation10 + $0x30] sm:$0xff] %v1115_v45  ;;  %v964_v48 = vpop.f32.mrf.mxu0  ;;  %v1035_v49 = vpop.f32.mrf.mxu1 }
 0x22b   :  { %v965_v50 = vadd.f32 %v964_v48, %v735_v39  ;;  %v1036_v51 = vadd.f32 %v1035_v49, %v743_v40 }
 0x22c   :  { %v966_v52 = vpop.f32.mrf.mxu0  ;;  %v1037_v53 = vpop.f32.mrf.mxu1 }
 0x22d   :  { %v1044_v54 = vmul.f32 0.5, %v965_v50  ;;  %v1046_v42 = vmul.f32 0.5, %v1036_v51  ;;  %v967_v57 = vadd.f32 %v966_v52, %v739_v46  ;;  %v1038_v58 = vadd.f32 %v1037_v53, %v747_v47 }
 0x22f   :  { %1361 = vtanh.f32 %v1044_v54  ;;  %v1045_v59 = vmul.f32 0.5, %v967_v57  ;;  %v1047_v60 = vmul.f32 0.5, %v1038_v58 }
 0x230   :  { %1363 = vtanh.f32 %v1046_v42 }
 0x231   :  { %1365 = vtanh.f32 %v1045_v59 }
 0x232   :  { %1367 = vtanh.f32 %v1047_v60 }
 0x23c   :  { %v1362_v62 = vpop.eup %1361 }
 0x23d   :  { %v1364_v63 = vpop.eup %1363  ;;  %v1060_v0 = vadd.f32 1.0, %v1362_v62 }
 0x23e   :  { %v1366_v61 = vpop.eup %1365  ;;  %v1062_v1 = vadd.f32 1.0, %v1364_v63 }
 0x23f   :  { %v1368_v2 = vpop.eup %1367  ;;  %v1061_v3 = vadd.f32 1.0, %v1366_v61  ;;  %v1068_v5 = vmul.f32 0.5, %v1060_v0 }
 0x240   :  { %v1063_v4 = vadd.f32 1.0, %v1368_v2  ;;  %v1070_v6 = vmul.f32 0.5, %v1062_v1 }
 0x241   :  { %v1069_v36 = vmul.f32 0.5, %v1061_v3 }
 0x242   :  { %v1071_v7 = vmul.f32 0.5, %v1063_v4 }
 0x243   :  { %v1116_v8 = vcombine.low %v1068_v5, %v1069_v36  ;;  %v1117_v56 = vcombine.high %v1068_v5, %v1069_v36 }
 0x244   :  { %v1118_v9 = vcombine.low %v1070_v6, %v1071_v7  ;;  %v1119_v10 = vcombine.high %v1070_v6, %v1071_v7 }
 0x245   :  { %v1126_v11 = vrot.slane %v1116_v8, %v1538_v55  ;;  %v1133_v12 = vrot.slane %v1117_v56, %v1538_v55 }
 0x246   :  { %v1140_v13 = vrot.slane %v1118_v9, %v1538_v55  ;;  %v1147_v14 = vrot.slane %v1119_v10, %v1538_v55 }
 0x248   :  { %v1148_v15 = vcombine.low %v1126_v11, %v1140_v13  ;;  %v1149_v16 = vcombine.high %v1126_v11, %v1140_v13  ;;  %v1150_v17 = vcombine.low %v1133_v12, %v1147_v14  ;;  %v1151_v18 = vcombine.high %v1133_v12, %v1147_v14 }
 0x24a   :  { %1161 = vst [vmem:[#allocation10 + $0x8] sm:$0xff] %v1148_v15  ;;  %1163 = vst [vmem:[#allocation10 + $0x18] sm:$0xff] %v1149_v16 }
 0x24b   :  { %1165 = vst [vmem:[#allocation10 + $0x28] sm:$0xff] %v1150_v17  ;;  %1167 = vst [vmem:[#allocation10 + $0x38] sm:$0xff] %v1151_v18 }
 0x24c   :  { %1172 = vsyncadd [#allocation4], 768  ;;  %s1489_s2 = smov [#allocation10]  }
 0x24d   :  { %s1173_s18 = sshll.u32 %s1489_s2, 4  ;;  %s1174_s18 = int_to_ptr.vmem [resolvable:$true] %s1173_s18 }
 0x24e   :  { %s1449_s19 = scalar_lea.vmem %s1174_s18, 256  ;;  %s1453_s20 = scalar_lea.vmem %s1174_s18, 1024 }
 0x24f   :  { %p1450_p6 = scmp.ne.s32.totalorder %s1174_s18, %s1449_s19  ;;  %p1454_p7 = scmp.lt.s32.totalorder %s1174_s18, %s1174_s18 }
 0x250   :  { %p1455_p8 = scmp.lt.s32.totalorder %s1453_s20, %s1449_s19 }
 0x252   :  { %p1456_p9 = por %p1455_p8, %p1454_p7 }
 0x254   :  { %p1457_p10 = pnand %p1456_p9, %p1450_p6 }
 0x256   :  { %1460 = shalt.err (!%p1457_p10)
}
 0x257   :  { %1179 = dma.vmem_to_hbm [thread:$0]  %s1174_s18, 256, %s1588_s5, [#allocation4], %s1481_s29, %s1481_s29, %s1482_s30  }
 0x258   :  { %1475 = dma.done.wait [#allocation4], 1024  }
 0x259   :  { %1476 = vsyncadd [#allocation4], 4294966272 }
 0x25a   :  { %1183 = vsyncpa [#allocation3], 1 }
 0x25b   :  { %1184 = vsyncpa [#allocation6], 1 }
 0x25c   :  { %1185 = vsyncpa [#allocation9], 1 }
 0x25d   :  { %1186 = vsyncpa [#allocation4], 1 }

// kernel: tpu_custom_call.1
= control target key start
LH: loop header
LB: loop body
LE: loop exit
PB: predicated region body
PF: predicated region fallthrough
CT: control target
= control target key end

     0   :  { %10 = vsyncpa [#allocation3], 0  ;;  %s1583_s0 = inlined_call_operand.hbm [shape: f32[2,1024], index: 0, kind: input, shape index: {}]   ;;  %s1584_s1 = inlined_call_operand.hbm [shape: f32[1024,128], index: 1, kind: input, shape index: {}]   ;;  %s1585_s2 = inlined_call_operand.vmem [shape: f32[1,128], index: 2, kind: input, shape index: {}]   ;;  %s1586_s3 = inlined_call_operand.hbm [shape: f32[128,1024], index: 3, kind: input, shape index: {}]   ;;  %s1587_s4 = inlined_call_operand.hbm [shape: f32[1,1024], index: 4, kind: input, shape index: {}]   ;;  %s1588_s5 = inlined_call_operand.hbm [shape: f32[2,1024], index: 5, kind: output, shape index: {}]  }
   0x1   :  { %11 = vsyncpa [#allocation6], 0 }
   0x2   :  { %12 = vsyncpa [#allocation9], 0 }
   0x3   :  { %13 = vsyncpa [#allocation4], 0 }
   0x4   :  { %18 = vsyncadd [#allocation3], 768  ;;  %s1477_s18 = smov [#allocation5]  }
   0x5   :  { %s31_s19 = sshll.u32 %s1477_s18, 4  ;;  %s32_s19 = int_to_ptr.vmem [resolvable:$true] %s31_s19 }
   0x6   :  { %s1377_s20 = scalar_lea.vmem %s32_s19, 16384  ;;  %p1382_p1 = scmp.lt.s32.totalorder %s32_s19, %s32_s19 }
   0x7   :  { %p1378_p0 = scmp.ne.s32.totalorder %s32_s19, %s1377_s20  ;;  %p1383_p2 = scmp.lt.s32.totalorder %s1377_s20, %s1377_s20 }
   0x9   :  { %p1384_p3 = por %p1383_p2, %p1382_p1 }
   0xb   :  { %p1385_p4 = pnand %p1384_p3, %p1378_p0 }
   0xd   :  { %1388 = shalt.err (!%p1385_p4)
}
   0xe   :  { %s1478_s21 = smov 128   ;;  %s1479_s22 = smov 8  }
   0xf   :  { %37 = dma.hbm_to_vmem [thread:$0]  %s1584_s1, 16384, %s32_s19, [#allocation6], %s1478_s21, %s1478_s21, %s1479_s22  }
  0x10   :  { %s1480_s25 = smov [#allocation2]  }
  0x11   :  { %s19_s26 = sshll.u32 %s1480_s25, 4  ;;  %s20_s26 = int_to_ptr.vmem [resolvable:$true] %s19_s26 }
  0x12   :  { %s1397_s27 = scalar_lea.vmem %s20_s26, 256  ;;  %s1401_s28 = scalar_lea.vmem %s20_s26, 1024 }
  0x13   :  { %p1398_p5 = scmp.ne.s32.totalorder %s20_s26, %s1397_s27  ;;  %p1402_p6 = scmp.lt.s32.totalorder %s20_s26, %s20_s26 }
  0x14   :  { %p1403_p7 = scmp.lt.s32.totalorder %s1401_s28, %s1397_s27 }
  0x16   :  { %p1404_p8 = por %p1403_p7, %p1402_p6 }
  0x18   :  { %p1405_p9 = pnand %p1404_p8, %p1398_p5 }
  0x1a   :  { %1408 = shalt.err (!%p1405_p9)
}
  0x1b   :  { %s1481_s29 = smov 256   ;;  %s1482_s30 = smov 16  }
  0x1c   :  { %25 = dma.hbm_to_vmem [thread:$0]  %s1583_s0, 256, %s20_s26, [#allocation3], %s1481_s29, %s1481_s29, %s1482_s30  }
  0x1d   :  { %s1483_s1 = smov [#allocation7]  }
  0x1e   :  { %s45_s8 = sshll.u32 %s1483_s1, 4  ;;  %s46_s8 = int_to_ptr.vmem [resolvable:$true] %s45_s8 }
  0x1f   :  { %s1417_s9 = scalar_lea.vmem %s46_s8, 16384  ;;  %p1422_p11 = scmp.lt.s32.totalorder %s46_s8, %s46_s8 }
  0x20   :  { %p1418_p10 = scmp.ne.s32.totalorder %s46_s8, %s1417_s9  ;;  %p1423_p12 = scmp.lt.s32.totalorder %s1417_s9, %s1417_s9 }
  0x22   :  { %p1424_p13 = por %p1423_p12, %p1422_p11 }
  0x24   :  { %p1425_p0 = pnand %p1424_p13, %p1418_p10 }
  0x26   :  { %1428 = shalt.err (!%p1425_p0)
}
  0x27   :  { %s1484_s10 = smov 1024   ;;  %s1485_s11 = smov 64  }
  0x28   :  { %51 = dma.hbm_to_vmem [thread:$0]  %s1586_s3, 16384, %s46_s8, [#allocation6], %s1484_s10, %s1484_s10, %s1485_s11  }
  0x29   :  { %s1486_s14 = smov [#allocation8]  }
  0x2a   :  { %s58_s15 = sshll.u32 %s1486_s14, 4  ;;  %s59_s15 = int_to_ptr.vmem [resolvable:$true] %s58_s15 }
  0x2b   :  { %s1437_s0 = scalar_lea.vmem %s59_s15, 128  ;;  %p1442_p2 = scmp.lt.s32.totalorder %s59_s15, %s59_s15 }
  0x2c   :  { %p1438_p1 = scmp.ne.s32.totalorder %s59_s15, %s1437_s0  ;;  %p1443_p3 = scmp.lt.s32.totalorder %s1437_s0, %s1437_s0 }
  0x2e   :  { %p1444_p4 = por %p1443_p3, %p1442_p2 }
  0x30   :  { %p1445_p5 = pnand %p1444_p4, %p1438_p1 }
  0x32   :  { %1448 = shalt.err (!%p1445_p5)
}
  0x33   :  { %61 = dma.hbm_to_vmem [thread:$0]  %s1587_s4, 128, %s59_s15, [#allocation9]  }
  0x34   :  { %1469 = dma.done.wait [#allocation3], 1024  }
  0x35   :  { %1470 = vsyncadd [#allocation3], 4294966272 }
  0x36   :  { %1471 = dma.done.wait [#allocation6], 32768  }
  0x37   :  { %1472 = vsyncadd [#allocation6], 4294934528 }
  0x38   :  { %1473 = dma.done.wait [#allocation9], 128  }
  0x39   :  { %1474 = vsyncadd [#allocation9], 4294967168  ;;  %v113_v0 = vld [vmem:[#allocation5 + $0xf8] sm:$0xff]  ;;  %v112_v4 = vld [vmem:[#allocation5 + $0xf0] sm:$0xff]  ;;  %v1487_v30 = vmov 1983009808   ;;  %v232_v32 = vlaneseq }
  0x3a   :  { %v145_v1 = vld [vmem:[#allocation5 + $0x1f8] sm:$0xff]  ;;  %1188 = vmatprep.subr.mxu0 %v113_v0  ;;  %v144_v5 = vld [vmem:[#allocation5 + $0x1f0] sm:$0xff]  ;;  %v111_v8 = vld [vmem:[#allocation5 + $0xe8] sm:$0xff]  ;;  %v230_v31 = vunpack.c.l.s4 %v1487_v30 }
  0x3b   :  { %v97_v2 = vld [vmem:[#allocation5 + $0x78] sm:$0xff]  ;;  %1223 = vmatprep.subr.mxu1 %v145_v1  ;;  %v96_v6 = vld [vmem:[#allocation5 + $0x70] sm:$0xff]  ;;  %v143_v9 = vld [vmem:[#allocation5 + $0x1e8] sm:$0xff]  ;;  %v1535_v42 = vshrl.u32 %v232_v32, 7 }
  0x3c   :  { %v129_v3 = vld [vmem:[#allocation5 + $0x178] sm:$0xff]  ;;  %1189 = vmatpush3.msra.mxu0 %v97_v2  ;;  %v128_v7 = vld [vmem:[#allocation5 + $0x170] sm:$0xff]  ;;  %v95_v10 = vld [vmem:[#allocation5 + $0x68] sm:$0xff]  ;;  %v231_v41 = vunpack.c.0.s8 %v230_v31 }
  0x3d   :  { %1224 = vmatpush3.msra.mxu1 %v129_v3  ;;  %1190 = vmatprep.subr.mxu0 %v112_v4  ;;  %v127_v11 = vld [vmem:[#allocation5 + $0x168] sm:$0xff]  ;;  %v110_v12 = vld [vmem:[#allocation5 + $0xe0] sm:$0xff]  ;;  %v109_v16 = vld [vmem:[#allocation5 + $0xd8] sm:$0xff] }
  0x3e   :  { %1225 = vmatprep.subr.mxu1 %v144_v5  ;;  %1191 = vmatpush3.msra.mxu0 %v96_v6  ;;  %v142_v13 = vld [vmem:[#allocation5 + $0x1e0] sm:$0xff]  ;;  %v141_v17 = vld [vmem:[#allocation5 + $0x1d8] sm:$0xff]  ;;  %v108_v20 = vld [vmem:[#allocation5 + $0xd0] sm:$0xff]  ;;  %v1538_v55 = vsub.s32 %v231_v41, %v1535_v42 }
  0x3f   :  { %1226 = vmatpush3.msra.mxu1 %v128_v7  ;;  %1192 = vmatprep.subr.mxu0 %v111_v8  ;;  %v94_v14 = vld [vmem:[#allocation5 + $0x60] sm:$0xff]  ;;  %v93_v18 = vld [vmem:[#allocation5 + $0x58] sm:$0xff]  ;;  %v140_v21 = vld [vmem:[#allocation5 + $0x1d0] sm:$0xff] }
  0x40   :  { %1227 = vmatprep.subr.mxu1 %v143_v9  ;;  %v126_v15 = vld [vmem:[#allocation5 + $0x160] sm:$0xff]  ;;  %1193 = vmatpush3.msra.mxu0 %v95_v10  ;;  %v125_v19 = vld [vmem:[#allocation5 + $0x158] sm:$0xff]  ;;  %v92_v22 = vld [vmem:[#allocation5 + $0x50] sm:$0xff] }
  0x41   :  { %1228 = vmatpush3.msra.mxu1 %v127_v11  ;;  %1194 = vmatprep.subr.mxu0 %v110_v12  ;;  %v124_v23 = vld [vmem:[#allocation5 + $0x150] sm:$0xff]  ;;  %v107_v24 = vld [vmem:[#allocation5 + $0xc8] sm:$0xff]  ;;  %v106_v28 = vld [vmem:[#allocation5 + $0xc0] sm:$0xff] }
  0x42   :  { %1229 = vmatprep.subr.mxu1 %v142_v13  ;;  %1195 = vmatpush3.msra.mxu0 %v94_v14  ;;  %v139_v25 = vld [vmem:[#allocation5 + $0x1c8] sm:$0xff]  ;;  %v138_v29 = vld [vmem:[#allocation5 + $0x1c0] sm:$0xff]  ;;  %v105_v35 = vld [vmem:[#allocation5 + $0xb8] sm:$0xff] }
  0x43   :  { %1230 = vmatpush3.msra.mxu1 %v126_v15  ;;  %1196 = vmatprep.subr.mxu0 %v109_v16  ;;  %v91_v26 = vld [vmem:[#allocation5 + $0x48] sm:$0xff]  ;;  %v90_v33 = vld [vmem:[#allocation5 + $0x40] sm:$0xff]  ;;  %v137_v36 = vld [vmem:[#allocation5 + $0x1b8] sm:$0xff] }
  0x44   :  { %1231 = vmatprep.subr.mxu1 %v141_v17  ;;  %1197 = vmatpush3.msra.mxu0 %v93_v18  ;;  %v123_v27 = vld [vmem:[#allocation5 + $0x148] sm:$0xff]  ;;  %v122_v34 = vld [vmem:[#allocation5 + $0x140] sm:$0xff]  ;;  %v89_v37 = vld [vmem:[#allocation5 + $0x38] sm:$0xff] }
  0x45   :  { %1232 = vmatpush3.msra.mxu1 %v125_v19  ;;  %1198 = vmatprep.subr.mxu0 %v108_v20  ;;  %v121_v38 = vld [vmem:[#allocation5 + $0x138] sm:$0xff]  ;;  %v104_v39 = vld [vmem:[#allocation5 + $0xb0] sm:$0xff]  ;;  %v103_v45 = vld [vmem:[#allocation5 + $0xa8] sm:$0xff] }
  0x46   :  { %1233 = vmatprep.subr.mxu1 %v140_v21  ;;  %1199 = vmatpush3.msra.mxu0 %v92_v22  ;;  %v136_v40 = vld [vmem:[#allocation5 + $0x1b0] sm:$0xff]  ;;  %v135_v46 = vld [vmem:[#allocation5 + $0x1a8] sm:$0xff]  ;;  %v102_v49 = vld [vmem:[#allocation5 + $0xa0] sm:$0xff] }
  0x47   :  { %1234 = vmatpush3.msra.mxu1 %v124_v23  ;;  %1200 = vmatprep.subr.mxu0 %v107_v24  ;;  %v88_v43 = vld [vmem:[#allocation5 + $0x30] sm:$0xff]  ;;  %v87_v47 = vld [vmem:[#allocation5 + $0x28] sm:$0xff]  ;;  %v134_v50 = vld [vmem:[#allocation5 + $0x1a0] sm:$0xff] }
  0x48   :  { %1235 = vmatprep.subr.mxu1 %v139_v25  ;;  %1201 = vmatpush3.msra.mxu0 %v91_v26  ;;  %v120_v44 = vld [vmem:[#allocation5 + $0x130] sm:$0xff]  ;;  %v119_v48 = vld [vmem:[#allocation5 + $0x128] sm:$0xff]  ;;  %v86_v51 = vld [vmem:[#allocation5 + $0x20] sm:$0xff] }
  0x49   :  { %1236 = vmatpush3.msra.mxu1 %v123_v27  ;;  %1202 = vmatprep.subr.mxu0 %v106_v28  ;;  %v118_v52 = vld [vmem:[#allocation5 + $0x120] sm:$0xff]  ;;  %v101_v53 = vld [vmem:[#allocation5 + $0x98] sm:$0xff]  ;;  %v100_v62 = vld [vmem:[#allocation5 + $0x90] sm:$0xff] }
  0x4a   :  { %1237 = vmatprep.subr.mxu1 %v138_v29  ;;  %1203 = vmatpush3.msra.mxu0 %v90_v33  ;;  %v133_v54 = vld [vmem:[#allocation5 + $0x198] sm:$0xff]  ;;  %v1341_v57 = vld [vmem:[#allocation2] ss:$16 sps:$4 sm:$0xff]   ;;  %v1345_v60 = vld [vmem:[#allocation2 + $0x4] ss:$16 sps:$4 sm:$0xff]  }
  0x4b   :  { %1238 = vmatpush3.msra.mxu1 %v122_v34  ;;  %1204 = vmatprep.subr.mxu0 %v105_v35  ;;  %v85_v56 = vld [vmem:[#allocation5 + $0x18] sm:$0xff]  ;;  %v1343_v58 = vld [vmem:[#allocation2 + $0x20] ss:$16 sps:$4 sm:$0xff]   ;;  %v1346_v61 = vld [vmem:[#allocation2 + $0x24] ss:$16 sps:$4 sm:$0xff]   ;;  %v235_v0 = vrot.slane %v1341_v57, %v1538_v55  ;;  %v242_v6 = vrot.slane %v1345_v60, %v1538_v55 }
  0x4c   :  { %1239 = vmatprep.subr.mxu1 %v137_v36  ;;  %1205 = vmatpush3.msra.mxu0 %v89_v37  ;;  %v117_v59 = vld [vmem:[#allocation5 + $0x118] sm:$0xff]  ;;  %v132_v63 = vld [vmem:[#allocation5 + $0x190] sm:$0xff]  ;;  %v249_v1 = vrot.slane %v1343_v58, %v1538_v55  ;;  %v99_v4 = vld [vmem:[#allocation5 + $0x88] sm:$0xff]  ;;  %v256_v7 = vrot.slane %v1346_v61, %v1538_v55 }
  0x4d   :  { %1240 = vmatpush3.msra.mxu1 %v121_v38  ;;  %1206 = vmatprep.subr.mxu0 %v104_v39  ;;  %v84_v2 = vld [vmem:[#allocation5 + $0x10] sm:$0xff]  ;;  %v131_v5 = vld [vmem:[#allocation5 + $0x188] sm:$0xff]  ;;  %v98_v10 = vld [vmem:[#allocation5 + $0x80] sm:$0xff] }
  0x4e   :  { %1241 = vmatprep.subr.mxu1 %v136_v40  ;;  %1207 = vmatpush3.msra.mxu0 %v88_v43  ;;  %v116_v3 = vld [vmem:[#allocation5 + $0x110] sm:$0xff]  ;;  %v83_v8 = vld [vmem:[#allocation5 + $0x8] sm:$0xff]  ;;  %v130_v11 = vld [vmem:[#allocation5 + $0x180] sm:$0xff]  ;;  %v258_v12 = vcombine.high %v235_v0, %v249_v1  ;;  %v257_v14 = vcombine.low %v235_v0, %v249_v1  ;;  %v260_v16 = vcombine.high %v242_v6, %v256_v7 }
  0x4f   :  { %1242 = vmatpush3.msra.mxu1 %v120_v44  ;;  %1208 = vmatprep.subr.mxu0 %v103_v45  ;;  %v115_v9 = vld [vmem:[#allocation5 + $0x108] sm:$0xff]  ;;  %v82_v13 = vld [vmem:[#allocation5] sm:$0xff]  ;;  %v177_v17 = vld [vmem:[#allocation5 + $0x2f8] sm:$0xff]  ;;  %v259_v18 = vcombine.low %v242_v6, %v256_v7 }
  0x50   :  { %1243 = vmatprep.subr.mxu1 %v135_v46  ;;  %1209 = vmatpush3.msra.mxu0 %v87_v47  ;;  %v114_v15 = vld [vmem:[#allocation5 + $0x100] sm:$0xff]  ;;  %v209_v19 = vld [vmem:[#allocation5 + $0x3f8] sm:$0xff]  ;;  %v176_v22 = vld [vmem:[#allocation5 + $0x2f0] sm:$0xff] }
  0x51   :  { %1244 = vmatpush3.msra.mxu1 %v119_v48  ;;  %1210 = vmatprep.subr.mxu0 %v102_v49  ;;  %v161_v20 = vld [vmem:[#allocation5 + $0x278] sm:$0xff]  ;;  %v208_v23 = vld [vmem:[#allocation5 + $0x3f0] sm:$0xff]  ;;  %v175_v26 = vld [vmem:[#allocation5 + $0x2e8] sm:$0xff] }
  0x52   :  { %1245 = vmatprep.subr.mxu1 %v134_v50  ;;  %1211 = vmatpush3.msra.mxu0 %v86_v51  ;;  %v193_v21 = vld [vmem:[#allocation5 + $0x378] sm:$0xff]  ;;  %v160_v24 = vld [vmem:[#allocation5 + $0x270] sm:$0xff]  ;;  %v207_v27 = vld [vmem:[#allocation5 + $0x3e8] sm:$0xff] }
  0x53   :  { %1246 = vmatpush3.msra.mxu1 %v118_v52  ;;  %1212 = vmatprep.subr.mxu0 %v101_v53  ;;  %v192_v25 = vld [vmem:[#allocation5 + $0x370] sm:$0xff]  ;;  %v159_v28 = vld [vmem:[#allocation5 + $0x268] sm:$0xff]  ;;  %v174_v30 = vld [vmem:[#allocation5 + $0x2e0] sm:$0xff] }
  0x54   :  { %1247 = vmatprep.subr.mxu1 %v133_v54  ;;  %1213 = vmatpush3.msra.mxu0 %v85_v56  ;;  %v191_v29 = vld [vmem:[#allocation5 + $0x368] sm:$0xff]  ;;  %v206_v31 = vld [vmem:[#allocation5 + $0x3e0] sm:$0xff]  ;;  %v173_v34 = vld [vmem:[#allocation5 + $0x2d8] sm:$0xff] }
  0x55   :  { %1248 = vmatpush3.msra.mxu1 %v117_v59  ;;  %1214 = vmatprep.subr.mxu0 %v100_v62  ;;  %v158_v32 = vld [vmem:[#allocation5 + $0x260] sm:$0xff]  ;;  %v205_v35 = vld [vmem:[#allocation5 + $0x3d8] sm:$0xff]  ;;  %v172_v38 = vld [vmem:[#allocation5 + $0x2d0] sm:$0xff] }
  0x56   :  { %1249 = vmatprep.subr.mxu1 %v132_v63  ;;  %1215 = vmatpush3.msra.mxu0 %v84_v2  ;;  %v190_v33 = vld [vmem:[#allocation5 + $0x360] sm:$0xff]  ;;  %v157_v36 = vld [vmem:[#allocation5 + $0x258] sm:$0xff]  ;;  %v204_v39 = vld [vmem:[#allocation5 + $0x3d0] sm:$0xff] }
  0x57   :  { %1250 = vmatpush3.msra.mxu1 %v116_v3  ;;  %1216 = vmatprep.subr.mxu0 %v99_v4  ;;  %v189_v37 = vld [vmem:[#allocation5 + $0x358] sm:$0xff]  ;;  %v156_v40 = vld [vmem:[#allocation5 + $0x250] sm:$0xff]  ;;  %v171_v43 = vld [vmem:[#allocation5 + $0x2c8] sm:$0xff] }
  0x58   :  { %1251 = vmatprep.subr.mxu1 %v131_v5  ;;  %1217 = vmatpush3.msra.mxu0 %v83_v8  ;;  %v188_v41 = vld [vmem:[#allocation5 + $0x350] sm:$0xff]  ;;  %v203_v44 = vld [vmem:[#allocation5 + $0x3c8] sm:$0xff]  ;;  %v170_v47 = vld [vmem:[#allocation5 + $0x2c0] sm:$0xff] }
  0x59   :  { %1252 = vmatpush3.msra.mxu1 %v115_v9  ;;  %1218 = vmatprep.subr.mxu0 %v98_v10  ;;  %v155_v45 = vld [vmem:[#allocation5 + $0x248] sm:$0xff]  ;;  %v202_v48 = vld [vmem:[#allocation5 + $0x3c0] sm:$0xff]  ;;  %v169_v51 = vld [vmem:[#allocation5 + $0x2b8] sm:$0xff] }
  0x5a   :  { %1253 = vmatprep.subr.mxu1 %v130_v11  ;;  %1219 = vmatpush3.msra.mxu0 %v82_v13  ;;  %v187_v46 = vld [vmem:[#allocation5 + $0x348] sm:$0xff]  ;;  %v154_v49 = vld [vmem:[#allocation5 + $0x240] sm:$0xff]  ;;  %v201_v52 = vld [vmem:[#allocation5 + $0x3b8] sm:$0xff] }
  0x5b   :  { %369 = vmatprep.mubr.f32.mxu0 %v258_v12  ;;  %1254 = vmatpush3.msra.mxu1 %v114_v15  ;;  %v186_v50 = vld [vmem:[#allocation5 + $0x340] sm:$0xff]  ;;  %v153_v53 = vld [vmem:[#allocation5 + $0x238] sm:$0xff]  ;;  %v168_v56 = vld [vmem:[#allocation5 + $0x2b0] sm:$0xff] }
  0x5c   :  { %370 = vmatmul.mubr.f32.vlgmr.msra.gmra.mxu0 %v257_v14  ;;  %439 = vmatprep.mubr.f32.mxu1 %v260_v16  ;;  %v185_v54 = vld [vmem:[#allocation5 + $0x338] sm:$0xff]  ;;  %v200_v57 = vld [vmem:[#allocation5 + $0x3b0] sm:$0xff]  ;;  %v167_v60 = vld [vmem:[#allocation5 + $0x2a8] sm:$0xff] }
  0x5d   :  { %1258 = vmatprep.subr.mxu0 %v177_v17  ;;  %1293 = vmatprep.subr.mxu1 %v209_v19  ;;  %v152_v58 = vld [vmem:[#allocation5 + $0x230] sm:$0xff]  ;;  %v199_v61 = vld [vmem:[#allocation5 + $0x3a8] sm:$0xff]  ;;  %v166_v0 = vld [vmem:[#allocation5 + $0x2a0] sm:$0xff] }
  0x5e   :  { %440 = vmatmul.mubr.f32.vlgmr.msra.gmra.mxu1 %v259_v18  ;;  %1259 = vmatpush3.msra.mxu0 %v161_v20  ;;  %v184_v59 = vld [vmem:[#allocation5 + $0x330] sm:$0xff]  ;;  %v151_v62 = vld [vmem:[#allocation5 + $0x228] sm:$0xff]  ;;  %v198_v1 = vld [vmem:[#allocation5 + $0x3a0] sm:$0xff] }
  0x5f   :  { %1294 = vmatpush3.msra.mxu1 %v193_v21  ;;  %1260 = vmatprep.subr.mxu0 %v176_v22  ;;  %v183_v63 = vld [vmem:[#allocation5 + $0x328] sm:$0xff]  ;;  %v150_v2 = vld [vmem:[#allocation5 + $0x220] sm:$0xff]  ;;  %v165_v8 = vld [vmem:[#allocation5 + $0x298] sm:$0xff] }
  0x60   :  { %1295 = vmatprep.subr.mxu1 %v208_v23  ;;  %1261 = vmatpush3.msra.mxu0 %v160_v24  ;;  %v1347_v3 = vld [vmem:[#allocation2 + $0x8] ss:$16 sps:$4 sm:$0xff]   ;;  %v182_v5 = vld [vmem:[#allocation5 + $0x320] sm:$0xff]  ;;  %v1351_v6 = vld [vmem:[#allocation2 + $0xc] ss:$16 sps:$4 sm:$0xff]  }
  0x61   :  { %1296 = vmatpush3.msra.mxu1 %v192_v25  ;;  %1262 = vmatprep.subr.mxu0 %v175_v26  ;;  %v1349_v4 = vld [vmem:[#allocation2 + $0x28] ss:$16 sps:$4 sm:$0xff]   ;;  %v1352_v7 = vld [vmem:[#allocation2 + $0x2c] ss:$16 sps:$4 sm:$0xff]   ;;  %v164_v12 = vld [vmem:[#allocation5 + $0x290] sm:$0xff]  ;;  %v271_v14 = vrot.slane %v1347_v3, %v1538_v55  ;;  %v278_v18 = vrot.slane %v1351_v6, %v1538_v55 }
  0x62   :  { %1297 = vmatprep.subr.mxu1 %v207_v27  ;;  %1263 = vmatpush3.msra.mxu0 %v159_v28  ;;  %v197_v9 = vld [vmem:[#allocation5 + $0x398] sm:$0xff]  ;;  %v196_v13 = vld [vmem:[#allocation5 + $0x390] sm:$0xff]  ;;  %v285_v15 = vrot.slane %v1349_v4, %v1538_v55  ;;  %v292_v19 = vrot.slane %v1352_v7, %v1538_v55  ;;  %v163_v20 = vld [vmem:[#allocation5 + $0x288] sm:$0xff] }
  0x63   :  { %1298 = vmatpush3.msra.mxu1 %v191_v29  ;;  %1264 = vmatprep.subr.mxu0 %v174_v30  ;;  %v149_v10 = vld [vmem:[#allocation5 + $0x218] sm:$0xff]  ;;  %v148_v16 = vld [vmem:[#allocation5 + $0x210] sm:$0xff]  ;;  %v195_v21 = vld [vmem:[#allocation5 + $0x388] sm:$0xff] }
  0x64   :  { %1299 = vmatprep.subr.mxu1 %v206_v31  ;;  %1265 = vmatpush3.msra.mxu0 %v158_v32  ;;  %v181_v11 = vld [vmem:[#allocation5 + $0x318] sm:$0xff]  ;;  %v180_v17 = vld [vmem:[#allocation5 + $0x310] sm:$0xff]  ;;  %v147_v22 = vld [vmem:[#allocation5 + $0x208] sm:$0xff]  ;;  %v294_v26 = vcombine.high %v271_v14, %v285_v15  ;;  %v296_v28 = vcombine.high %v278_v18, %v292_v19  ;;  %v293_v30 = vcombine.low %v271_v14, %v285_v15 }
  0x65   :  { %1300 = vmatpush3.msra.mxu1 %v190_v33  ;;  %1266 = vmatprep.subr.mxu0 %v173_v34  ;;  %v179_v23 = vld [vmem:[#allocation5 + $0x308] sm:$0xff]  ;;  %v162_v24 = vld [vmem:[#allocation5 + $0x280] sm:$0xff]  ;;  %v295_v31 = vcombine.low %v278_v18, %v292_v19  ;;  %v709_v33 = vld [vmem:[#allocation7 + $0x3d8] sm:$0xff] }
  0x66   :  { %1301 = vmatprep.subr.mxu1 %v205_v35  ;;  %1267 = vmatpush3.msra.mxu0 %v157_v36  ;;  %v194_v25 = vld [vmem:[#allocation5 + $0x380] sm:$0xff]  ;;  %v707_v32 = vld [vmem:[#allocation7 + $0x3c8] sm:$0xff]  ;;  %v708_v35 = vld [vmem:[#allocation7 + $0x3d0] sm:$0xff] }
  0x67   :  { %1302 = vmatpush3.msra.mxu1 %v189_v37  ;;  %1268 = vmatprep.subr.mxu0 %v172_v38  ;;  %v146_v27 = vld [vmem:[#allocation5 + $0x200] sm:$0xff]  ;;  %v699_v36 = vld [vmem:[#allocation7 + $0x388] sm:$0xff]  ;;  %v701_v37 = vld [vmem:[#allocation7 + $0x398] sm:$0xff] }
  0x68   :  { %1303 = vmatprep.subr.mxu1 %v204_v39  ;;  %1269 = vmatpush3.msra.mxu0 %v156_v40  ;;  %v178_v29 = vld [vmem:[#allocation5 + $0x300] sm:$0xff]  ;;  %v700_v39 = vld [vmem:[#allocation7 + $0x390] sm:$0xff]  ;;  %v691_v40 = vld [vmem:[#allocation7 + $0x348] sm:$0xff] }
  0x69   :  { %1304 = vmatpush3.msra.mxu1 %v188_v41  ;;  %1270 = vmatprep.subr.mxu0 %v171_v43  ;;  %v706_v34 = vld [vmem:[#allocation7 + $0x3c0] sm:$0xff]  ;;  %v693_v41 = vld [vmem:[#allocation7 + $0x358] sm:$0xff]  ;;  %v635_v6 = vld [vmem:[#allocation7 + $0x188] sm:$0xff] }
  0x6a   :  { %1305 = vmatprep.subr.mxu1 %v203_v44  ;;  %1271 = vmatpush3.msra.mxu0 %v155_v45  ;;  %v698_v38 = vld [vmem:[#allocation7 + $0x380] sm:$0xff]  ;;  %v692_v44 = vld [vmem:[#allocation7 + $0x350] sm:$0xff]  ;;  %v683_v45 = vld [vmem:[#allocation7 + $0x308] sm:$0xff] }
  0x6b   :  { %1306 = vmatpush3.msra.mxu1 %v187_v46  ;;  %1272 = vmatprep.subr.mxu0 %v170_v47  ;;  %v690_v43 = vld [vmem:[#allocation7 + $0x340] sm:$0xff]  ;;  %v685_v46 = vld [vmem:[#allocation7 + $0x318] sm:$0xff]  ;;  %v619_v14 = vld [vmem:[#allocation7 + $0x108] sm:$0xff] }
  0x6c   :  { %1307 = vmatprep.subr.mxu1 %v202_v48  ;;  %1273 = vmatpush3.msra.mxu0 %v154_v49  ;;  %v682_v47 = vld [vmem:[#allocation7 + $0x300] sm:$0xff]  ;;  %v684_v48 = vld [vmem:[#allocation7 + $0x310] sm:$0xff]  ;;  %v675_v49 = vld [vmem:[#allocation7 + $0x2c8] sm:$0xff] }
  0x6d   :  { %1308 = vmatpush3.msra.mxu1 %v186_v50  ;;  %1274 = vmatprep.subr.mxu0 %v169_v51  ;;  %v677_v50 = vld [vmem:[#allocation7 + $0x2d8] sm:$0xff]  ;;  %v674_v51 = vld [vmem:[#allocation7 + $0x2c0] sm:$0xff]  ;;  %v611_v18 = vld [vmem:[#allocation7 + $0xc8] sm:$0xff] }
  0x6e   :  { %1309 = vmatprep.subr.mxu1 %v201_v52  ;;  %1275 = vmatpush3.msra.mxu0 %v153_v53  ;;  %v676_v52 = vld [vmem:[#allocation7 + $0x2d0] sm:$0xff]  ;;  %v667_v53 = vld [vmem:[#allocation7 + $0x288] sm:$0xff]  ;;  %v645_v3 = vld [vmem:[#allocation7 + $0x1d8] sm:$0xff] }
  0x6f   :  { %1310 = vmatpush3.msra.mxu1 %v185_v54  ;;  %1276 = vmatprep.subr.mxu0 %v168_v56  ;;  %v669_v54 = vld [vmem:[#allocation7 + $0x298] sm:$0xff]  ;;  %v666_v56 = vld [vmem:[#allocation7 + $0x280] sm:$0xff] }
  0x70   :  { %1311 = vmatprep.subr.mxu1 %v200_v57  ;;  %1277 = vmatpush3.msra.mxu0 %v152_v58  ;;  %v668_v57 = vld [vmem:[#allocation7 + $0x290] sm:$0xff]  ;;  %v659_v58 = vld [vmem:[#allocation7 + $0x248] sm:$0xff]  ;;  %v642_v4 = vld [vmem:[#allocation7 + $0x1c0] sm:$0xff] }
  0x71   :  { %1312 = vmatpush3.msra.mxu1 %v184_v59  ;;  %1278 = vmatprep.subr.mxu0 %v167_v60  ;;  %v661_v59 = vld [vmem:[#allocation7 + $0x258] sm:$0xff]  ;;  %v658_v60 = vld [vmem:[#allocation7 + $0x240] sm:$0xff] }
  0x72   :  { %1313 = vmatprep.subr.mxu1 %v199_v61  ;;  %1279 = vmatpush3.msra.mxu0 %v151_v62  ;;  %v660_v61 = vld [vmem:[#allocation7 + $0x250] sm:$0xff]  ;;  %v651_v62 = vld [vmem:[#allocation7 + $0x208] sm:$0xff]  ;;  %v637_v7 = vld [vmem:[#allocation7 + $0x198] sm:$0xff] }
  0x73   :  { %1314 = vmatpush3.msra.mxu1 %v183_v63  ;;  %1280 = vmatprep.subr.mxu0 %v166_v0  ;;  %v653_v63 = vld [vmem:[#allocation7 + $0x218] sm:$0xff]  ;;  %v650_v0 = vld [vmem:[#allocation7 + $0x200] sm:$0xff] }
  0x74   :  { %1315 = vmatprep.subr.mxu1 %v198_v1  ;;  %1281 = vmatpush3.msra.mxu0 %v150_v2  ;;  %v652_v1 = vld [vmem:[#allocation7 + $0x210] sm:$0xff]  ;;  %v643_v2 = vld [vmem:[#allocation7 + $0x1c8] sm:$0xff]  ;;  %v621_v15 = vld [vmem:[#allocation7 + $0x118] sm:$0xff] }
  0x75   :  { %1316 = vmatpush3.msra.mxu1 %v182_v5  ;;  %1282 = vmatprep.subr.mxu0 %v165_v8  ;;  %v644_v5 = vld [vmem:[#allocation7 + $0x1d0] sm:$0xff]  ;;  %v634_v8 = vld [vmem:[#allocation7 + $0x180] sm:$0xff]  ;;  %v613_v19 = vld [vmem:[#allocation7 + $0xd8] sm:$0xff] }
  0x76   :  { %1317 = vmatprep.subr.mxu1 %v197_v9  ;;  %1283 = vmatpush3.msra.mxu0 %v149_v10  ;;  %v636_v9 = vld [vmem:[#allocation7 + $0x190] sm:$0xff]  ;;  %v627_v10 = vld [vmem:[#allocation7 + $0x148] sm:$0xff] }
  0x77   :  { %1318 = vmatpush3.msra.mxu1 %v181_v11  ;;  %1284 = vmatprep.subr.mxu0 %v164_v12  ;;  %v629_v11 = vld [vmem:[#allocation7 + $0x158] sm:$0xff]  ;;  %v626_v12 = vld [vmem:[#allocation7 + $0x140] sm:$0xff] }
  0x78   :  { %1319 = vmatprep.subr.mxu1 %v196_v13  ;;  %1285 = vmatpush3.msra.mxu0 %v148_v16  ;;  %v628_v13 = vld [vmem:[#allocation7 + $0x150] sm:$0xff]  ;;  %v618_v16 = vld [vmem:[#allocation7 + $0x100] sm:$0xff] }
  0x79   :  { %1320 = vmatpush3.msra.mxu1 %v180_v17  ;;  %1286 = vmatprep.subr.mxu0 %v163_v20  ;;  %v620_v17 = vld [vmem:[#allocation7 + $0x110] sm:$0xff]  ;;  %v610_v20 = vld [vmem:[#allocation7 + $0xc0] sm:$0xff] }
  0x7a   :  { %1321 = vmatprep.subr.mxu1 %v195_v21  ;;  %1287 = vmatpush3.msra.mxu0 %v147_v22  ;;  %v612_v21 = vld [vmem:[#allocation7 + $0xd0] sm:$0xff]  ;;  %v603_v22 = vld [vmem:[#allocation7 + $0x88] sm:$0xff] }
  0x7b   :  { %1322 = vmatpush3.msra.mxu1 %v179_v23  ;;  %1288 = vmatprep.subr.mxu0 %v162_v24  ;;  %v605_v23 = vld [vmem:[#allocation7 + $0x98] sm:$0xff]  ;;  %v602_v24 = vld [vmem:[#allocation7 + $0x80] sm:$0xff] }
  0x7c   :  { %1323 = vmatprep.subr.mxu1 %v194_v25  ;;  %1289 = vmatpush3.msra.mxu0 %v146_v27  ;;  %v604_v25 = vld [vmem:[#allocation7 + $0x90] sm:$0xff]  ;;  %v597_v27 = vld [vmem:[#allocation7 + $0x58] sm:$0xff] }
  0x7d   :  { %509 = vmatprep.mubr.f32.mxu0 %v294_v26  ;;  %1324 = vmatpush3.msra.mxu1 %v178_v29  ;;  %v595_v26 = vld [vmem:[#allocation7 + $0x48] sm:$0xff]  ;;  %v596_v29 = vld [vmem:[#allocation7 + $0x50] sm:$0xff] }
  0x7e   :  { %579 = vmatprep.mubr.f32.mxu1 %v296_v28  ;;  %510 = vmatmul.mubr.f32.vlgmr.msra.gmra.mxu0 %v293_v30  ;;  %v594_v28 = vld [vmem:[#allocation7 + $0x40] sm:$0xff]  ;;  %v587_v30 = vld [vmem:[#allocation7 + $0x8] sm:$0xff] }
  0x7f   :  { %580 = vmatmul.mubr.f32.vlgmr.msra.gmra.mxu1 %v295_v31  ;;  %756 = vmatprep.subr.mxu0 %v707_v32  ;;  %v589_v31 = vld [vmem:[#allocation7 + $0x18] sm:$0xff]  ;;  %v586_v32 = vld [vmem:[#allocation7] sm:$0xff] }
  0x80   :  { %827 = vmatprep.subr.mxu1 %v709_v33  ;;  %757 = vmatpush1.msra.mxu0 %v706_v34  ;;  %v588_v33 = vld [vmem:[#allocation7 + $0x10] sm:$0xff]  ;;  %v711_v34 = vld [vmem:[#allocation7 + $0x3e8] sm:$0xff] }
  0x81   :  { %828 = vmatpush1.msra.mxu1 %v708_v35  ;;  %758 = vmatprep.subr.mxu0 %v699_v36  ;;  %v713_v35 = vld [vmem:[#allocation7 + $0x3f8] sm:$0xff]  ;;  %v1488_v36 = vmov 0.0  }
  0x82   :  { %829 = vmatprep.subr.mxu1 %v701_v37  ;;  %759 = vmatpush1.msra.mxu0 %v698_v38 }
  0x83   :  { %830 = vmatpush1.msra.mxu1 %v700_v39  ;;  %760 = vmatprep.subr.mxu0 %v691_v40 }
  0x84   :  { %831 = vmatprep.subr.mxu1 %v693_v41  ;;  %761 = vmatpush1.msra.mxu0 %v690_v43  ;;  %v1187_v41 = vld [vmem:[%s1585_s2] ss:$0 sm:$0xff] }
  0x85   :  { %832 = vmatpush1.msra.mxu1 %v692_v44  ;;  %762 = vmatprep.subr.mxu0 %v683_v45 }
  0x86   :  { %833 = vmatprep.subr.mxu1 %v685_v46  ;;  %763 = vmatpush1.msra.mxu0 %v682_v47 }
  0x87   :  { %834 = vmatpush1.msra.mxu1 %v684_v48  ;;  %764 = vmatprep.subr.mxu0 %v675_v49 }
  0x88   :  { %835 = vmatprep.subr.mxu1 %v677_v50  ;;  %765 = vmatpush1.msra.mxu0 %v674_v51 }
  0x89   :  { %836 = vmatpush1.msra.mxu1 %v676_v52  ;;  %766 = vmatprep.subr.mxu0 %v667_v53 }
  0x8a   :  { %837 = vmatprep.subr.mxu1 %v669_v54  ;;  %767 = vmatpush1.msra.mxu0 %v666_v56 }
  0x8b   :  { %838 = vmatpush1.msra.mxu1 %v668_v57  ;;  %768 = vmatprep.subr.mxu0 %v659_v58  ;;  %v710_v57 = vld [vmem:[#allocation7 + $0x3e0] sm:$0xff]  ;;  %v712_v58 = vld [vmem:[#allocation7 + $0x3f0] sm:$0xff] }
  0x8c   :  { %839 = vmatprep.subr.mxu1 %v661_v59  ;;  %769 = vmatpush1.msra.mxu0 %v658_v60  ;;  %v703_v59 = vld [vmem:[#allocation7 + $0x3a8] sm:$0xff]  ;;  %v705_v60 = vld [vmem:[#allocation7 + $0x3b8] sm:$0xff] }
  0x8d   :  { %840 = vmatpush1.msra.mxu1 %v660_v61  ;;  %770 = vmatprep.subr.mxu0 %v651_v62  ;;  %v702_v61 = vld [vmem:[#allocation7 + $0x3a0] sm:$0xff]  ;;  %v704_v62 = vld [vmem:[#allocation7 + $0x3b0] sm:$0xff] }
  0x8e   :  { %841 = vmatprep.subr.mxu1 %v653_v63  ;;  %771 = vmatpush1.msra.mxu0 %v650_v0  ;;  %v695_v63 = vld [vmem:[#allocation7 + $0x368] sm:$0xff]  ;;  %v697_v0 = vld [vmem:[#allocation7 + $0x378] sm:$0xff] }
  0x8f   :  { %842 = vmatpush1.msra.mxu1 %v652_v1  ;;  %772 = vmatprep.subr.mxu0 %v643_v2  ;;  %v694_v1 = vld [vmem:[#allocation7 + $0x360] sm:$0xff]  ;;  %v696_v2 = vld [vmem:[#allocation7 + $0x370] sm:$0xff] }
  0x90   :  { %843 = vmatprep.subr.mxu1 %v645_v3  ;;  %773 = vmatpush1.msra.mxu0 %v642_v4  ;;  %v687_v3 = vld [vmem:[#allocation7 + $0x328] sm:$0xff]  ;;  %v689_v4 = vld [vmem:[#allocation7 + $0x338] sm:$0xff] }
  0x91   :  { %844 = vmatpush1.msra.mxu1 %v644_v5  ;;  %774 = vmatprep.subr.mxu0 %v635_v6  ;;  %v686_v5 = vld [vmem:[#allocation7 + $0x320] sm:$0xff]  ;;  %v688_v6 = vld [vmem:[#allocation7 + $0x330] sm:$0xff] }
  0x92   :  { %845 = vmatprep.subr.mxu1 %v637_v7  ;;  %775 = vmatpush1.msra.mxu0 %v634_v8  ;;  %v679_v7 = vld [vmem:[#allocation7 + $0x2e8] sm:$0xff]  ;;  %v681_v8 = vld [vmem:[#allocation7 + $0x2f8] sm:$0xff] }
  0x93   :  { %846 = vmatpush1.msra.mxu1 %v636_v9  ;;  %776 = vmatprep.subr.mxu0 %v627_v10  ;;  %v678_v9 = vld [vmem:[#allocation7 + $0x2e0] sm:$0xff]  ;;  %v680_v10 = vld [vmem:[#allocation7 + $0x2f0] sm:$0xff] }
  0x94   :  { %847 = vmatprep.subr.mxu1 %v629_v11  ;;  %777 = vmatpush1.msra.mxu0 %v626_v12  ;;  %v671_v11 = vld [vmem:[#allocation7 + $0x2a8] sm:$0xff]  ;;  %v673_v12 = vld [vmem:[#allocation7 + $0x2b8] sm:$0xff] }
  0x95   :  { %848 = vmatpush1.msra.mxu1 %v628_v13  ;;  %778 = vmatprep.subr.mxu0 %v619_v14  ;;  %v670_v13 = vld [vmem:[#allocation7 + $0x2a0] sm:$0xff]  ;;  %v672_v14 = vld [vmem:[#allocation7 + $0x2b0] sm:$0xff] }
  0x96   :  { %849 = vmatprep.subr.mxu1 %v621_v15  ;;  %779 = vmatpush1.msra.mxu0 %v618_v16  ;;  %v663_v15 = vld [vmem:[#allocation7 + $0x268] sm:$0xff]  ;;  %v665_v16 = vld [vmem:[#allocation7 + $0x278] sm:$0xff] }
  0x97   :  { %850 = vmatpush1.msra.mxu1 %v620_v17  ;;  %780 = vmatprep.subr.mxu0 %v611_v18  ;;  %v662_v17 = vld [vmem:[#allocation7 + $0x260] sm:$0xff]  ;;  %v664_v18 = vld [vmem:[#allocation7 + $0x270] sm:$0xff] }
  0x98   :  { %851 = vmatprep.subr.mxu1 %v613_v19  ;;  %781 = vmatpush1.msra.mxu0 %v610_v20  ;;  %v655_v19 = vld [vmem:[#allocation7 + $0x228] sm:$0xff]  ;;  %v657_v20 = vld [vmem:[#allocation7 + $0x238] sm:$0xff] }
  0x99   :  { %852 = vmatpush1.msra.mxu1 %v612_v21  ;;  %782 = vmatprep.subr.mxu0 %v603_v22  ;;  %v654_v21 = vld [vmem:[#allocation7 + $0x220] sm:$0xff]  ;;  %v656_v22 = vld [vmem:[#allocation7 + $0x230] sm:$0xff] }
  0x9a   :  { %853 = vmatprep.subr.mxu1 %v605_v23  ;;  %783 = vmatpush1.msra.mxu0 %v602_v24  ;;  %v647_v23 = vld [vmem:[#allocation7 + $0x1e8] sm:$0xff]  ;;  %v649_v24 = vld [vmem:[#allocation7 + $0x1f8] sm:$0xff] }
  0x9b   :  { %854 = vmatpush1.msra.mxu1 %v604_v25  ;;  %784 = vmatprep.subr.mxu0 %v595_v26  ;;  %v646_v25 = vld [vmem:[#allocation7 + $0x1e0] sm:$0xff]  ;;  %v648_v26 = vld [vmem:[#allocation7 + $0x1f0] sm:$0xff] }
  0x9c   :  { %855 = vmatprep.subr.mxu1 %v597_v27  ;;  %785 = vmatpush1.msra.mxu0 %v594_v28  ;;  %v639_v27 = vld [vmem:[#allocation7 + $0x1a8] sm:$0xff]  ;;  %v641_v28 = vld [vmem:[#allocation7 + $0x1b8] sm:$0xff] }
  0x9d   :  { %856 = vmatpush1.msra.mxu1 %v596_v29  ;;  %786 = vmatprep.subr.mxu0 %v587_v30  ;;  %v638_v29 = vld [vmem:[#allocation7 + $0x1a0] sm:$0xff]  ;;  %v640_v30 = vld [vmem:[#allocation7 + $0x1b0] sm:$0xff] }
  0x9e   :  { %857 = vmatprep.subr.mxu1 %v589_v31  ;;  %787 = vmatpush1.msra.mxu0 %v586_v32  ;;  %v631_v31 = vld [vmem:[#allocation7 + $0x168] sm:$0xff]  ;;  %v633_v32 = vld [vmem:[#allocation7 + $0x178] sm:$0xff] }
  0x9f   :  { %858 = vmatpush1.msra.mxu1 %v588_v33  ;;  %820 = vmatprep.mubr.f32.mxu0 %v1488_v36  ;;  %v630_v33 = vld [vmem:[#allocation7 + $0x160] sm:$0xff] }
  0xa0   :  { %891 = vmatprep.mubr.f32.mxu1 %v1488_v36  ;;  %898 = vmatprep.subr.mxu0 %v711_v34  ;;  %v632_v34 = vld [vmem:[#allocation7 + $0x170] sm:$0xff] }
  0xa1   :  { %969 = vmatprep.subr.mxu1 %v713_v35  ;;  %v623_v35 = vld [vmem:[#allocation7 + $0x128] sm:$0xff] }
 0x11c   :  { %v1220_v37 = vpop.f32.mrf.mxu0 }
 0x11e   :  { %v1255_v38 = vpop.f32.mrf.mxu1  ;;  %v1221_v39 = vpop.f32.mrf.mxu0 }
 0x11f   :  { %v1222_v40 = vadd.f32 %v1221_v39, %v1220_v37  ;;  %v625_v37 = vld [vmem:[#allocation7 + $0x138] sm:$0xff]  ;;  %v624_v39 = vld [vmem:[#allocation7 + $0x130] sm:$0xff] }
 0x120   :  { %v1256_v43 = vpop.f32.mrf.mxu1 }
 0x121   :  { %v372_v44 = vadd.f32 %v1222_v40, %v1187_v41  ;;  %v1257_v45 = vadd.f32 %v1256_v43, %v1255_v38  ;;  %v622_v38 = vld [vmem:[#allocation7 + $0x120] sm:$0xff]  ;;  %v615_v40 = vld [vmem:[#allocation7 + $0xe8] sm:$0xff]  ;;  %v617_v41 = vld [vmem:[#allocation7 + $0xf8] sm:$0xff] }
 0x122   :  { %v614_v43 = vld [vmem:[#allocation7 + $0xe0] sm:$0xff] }
 0x123   :  { %v442_v50 = vadd.f32 %v1257_v45, %v372_v44  ;;  %v616_v44 = vld [vmem:[#allocation7 + $0xf0] sm:$0xff]  ;;  %v607_v45 = vld [vmem:[#allocation7 + $0xa8] sm:$0xff] }
 0x13e   :  { %v1290_v46 = vpop.f32.mrf.mxu0 }
 0x13f   :  { %v1325_v47 = vpop.f32.mrf.mxu1 }
 0x140   :  { %v1291_v48 = vpop.f32.mrf.mxu0 }
 0x141   :  { %v1326_v49 = vpop.f32.mrf.mxu1  ;;  %v1292_v51 = vadd.f32 %v1291_v48, %v1290_v46  ;;  %v609_v46 = vld [vmem:[#allocation7 + $0xb8] sm:$0xff]  ;;  %v608_v48 = vld [vmem:[#allocation7 + $0xb0] sm:$0xff] }
 0x142   :  { %v1327_v53 = vadd.f32 %v1326_v49, %v1325_v47  ;;  %v606_v47 = vld [vmem:[#allocation7 + $0xa0] sm:$0xff]  ;;  %v599_v49 = vld [vmem:[#allocation7 + $0x68] sm:$0xff] }
 0x143   :  { %v512_v52 = vadd.f32 %v1292_v51, %v442_v50  ;;  %v601_v50 = vld [vmem:[#allocation7 + $0x78] sm:$0xff]  ;;  %v598_v51 = vld [vmem:[#allocation7 + $0x60] sm:$0xff] }
 0x145   :  { %v582_v54 = vadd.f32 %v1327_v53, %v512_v52  ;;  %v600_v52 = vld [vmem:[#allocation7 + $0x70] sm:$0xff]  ;;  %v591_v53 = vld [vmem:[#allocation7 + $0x28] sm:$0xff] }
 0x147   :  { %v1553_v56 = vmax.f32 %v582_v54, 0.0  ;;  %v593_v54 = vld [vmem:[#allocation7 + $0x38] sm:$0xff] }
 0x149   :  { %821 = vmatmul.mubr.f32.vlgmr.msra.gmra.mxu0 %v1553_v56  ;;  %892 = vmatmul.mubr.f32.vlgmr.msra.gmra.mxu1 %v1553_v56 }
 0x14a   :  { %899 = vmatpush1.msra.mxu0 %v710_v57  ;;  %970 = vmatpush1.msra.mxu1 %v712_v58  ;;  %v590_v57 = vld [vmem:[#allocation7 + $0x20] sm:$0xff]  ;;  %v592_v58 = vld [vmem:[#allocation7 + $0x30] sm:$0xff] }
 0x14b   :  { %900 = vmatprep.subr.mxu0 %v703_v59  ;;  %971 = vmatprep.subr.mxu1 %v705_v60  ;;  %v718_v59 = vsub.s32 0, %v1535_v42  ;;  %v726_v60 = vsub.s32 2, %v1535_v42 }
 0x14c   :  { %901 = vmatpush1.msra.mxu0 %v702_v61  ;;  %972 = vmatpush1.msra.mxu1 %v704_v62  ;;  %v714_v61 = vld [vmem:[#allocation8] sm:$0xff]  ;;  %v722_v62 = vsub.s32 1, %v1535_v42 }
 0x14d   :  { %902 = vmatprep.subr.mxu0 %v695_v63  ;;  %973 = vmatprep.subr.mxu1 %v697_v0  ;;  %v730_v63 = vsub.s32 3, %v1535_v42  ;;  %v719_v0 = vrot.slane %v714_v61, %v718_v59 }
 0x14e   :  { %903 = vmatpush1.msra.mxu0 %v694_v1  ;;  %974 = vmatpush1.msra.mxu1 %v696_v2  ;;  %v727_v1 = vrot.slane %v714_v61, %v726_v60  ;;  %v723_v2 = vrot.slane %v714_v61, %v722_v62 }
 0x14f   :  { %904 = vmatprep.subr.mxu0 %v687_v3  ;;  %975 = vmatprep.subr.mxu1 %v689_v4  ;;  %v731_v3 = vrot.slane %v714_v61, %v730_v63 }
 0x150   :  { %905 = vmatpush1.msra.mxu0 %v686_v5  ;;  %976 = vmatpush1.msra.mxu1 %v688_v6 }
 0x151   :  { %906 = vmatprep.subr.mxu0 %v679_v7  ;;  %977 = vmatprep.subr.mxu1 %v681_v8 }
 0x152   :  { %907 = vmatpush1.msra.mxu0 %v678_v9  ;;  %978 = vmatpush1.msra.mxu1 %v680_v10 }
 0x153   :  { %908 = vmatprep.subr.mxu0 %v671_v11  ;;  %979 = vmatprep.subr.mxu1 %v673_v12 }
 0x154   :  { %909 = vmatpush1.msra.mxu0 %v670_v13  ;;  %980 = vmatpush1.msra.mxu1 %v672_v14 }
 0x155   :  { %910 = vmatprep.subr.mxu0 %v663_v15  ;;  %981 = vmatprep.subr.mxu1 %v665_v16 }
 0x156   :  { %911 = vmatpush1.msra.mxu0 %v662_v17  ;;  %982 = vmatpush1.msra.mxu1 %v664_v18 }
 0x157   :  { %912 = vmatprep.subr.mxu0 %v655_v19  ;;  %983 = vmatprep.subr.mxu1 %v657_v20 }
 0x158   :  { %913 = vmatpush1.msra.mxu0 %v654_v21  ;;  %984 = vmatpush1.msra.mxu1 %v656_v22 }
 0x159   :  { %914 = vmatprep.subr.mxu0 %v647_v23  ;;  %985 = vmatprep.subr.mxu1 %v649_v24 }
 0x15a   :  { %915 = vmatpush1.msra.mxu0 %v646_v25  ;;  %986 = vmatpush1.msra.mxu1 %v648_v26 }
 0x15b   :  { %916 = vmatprep.subr.mxu0 %v639_v27  ;;  %987 = vmatprep.subr.mxu1 %v641_v28  ;;  %v734_v28 = vsub.s32 4, %v1535_v42 }
 0x15c   :  { %917 = vmatpush1.msra.mxu0 %v638_v29  ;;  %988 = vmatpush1.msra.mxu1 %v640_v30  ;;  %v742_v29 = vsub.s32 6, %v1535_v42 }
 0x15d   :  { %918 = vmatprep.subr.mxu0 %v631_v31  ;;  %989 = vmatprep.subr.mxu1 %v633_v32 }
 0x15e   :  { %919 = vmatpush1.msra.mxu0 %v630_v33  ;;  %990 = vmatpush1.msra.mxu1 %v632_v34 }
 0x15f   :  { %920 = vmatprep.subr.mxu0 %v623_v35  ;;  %991 = vmatprep.subr.mxu1 %v625_v37  ;;  %v738_v37 = vsub.s32 5, %v1535_v42 }
 0x160   :  { %921 = vmatpush1.msra.mxu0 %v622_v38  ;;  %992 = vmatpush1.msra.mxu1 %v624_v39  ;;  %v746_v38 = vsub.s32 7, %v1535_v42  ;;  %v735_v39 = vrot.slane %v714_v61, %v734_v28 }
 0x161   :  { %922 = vmatprep.subr.mxu0 %v615_v40  ;;  %993 = vmatprep.subr.mxu1 %v617_v41  ;;  %v743_v40 = vrot.slane %v714_v61, %v742_v29 }
 0x162   :  { %923 = vmatpush1.msra.mxu0 %v614_v43  ;;  %994 = vmatpush1.msra.mxu1 %v616_v44 }
 0x163   :  { %924 = vmatprep.subr.mxu0 %v607_v45  ;;  %995 = vmatprep.subr.mxu1 %v609_v46  ;;  %v739_v46 = vrot.slane %v714_v61, %v738_v37 }
 0x164   :  { %925 = vmatpush1.msra.mxu0 %v606_v47  ;;  %996 = vmatpush1.msra.mxu1 %v608_v48  ;;  %v747_v47 = vrot.slane %v714_v61, %v746_v38 }
 0x165   :  { %926 = vmatprep.subr.mxu0 %v599_v49  ;;  %997 = vmatprep.subr.mxu1 %v601_v50 }
 0x166   :  { %927 = vmatpush1.msra.mxu0 %v598_v51  ;;  %998 = vmatpush1.msra.mxu1 %v600_v52 }
 0x167   :  { %928 = vmatprep.subr.mxu0 %v591_v53  ;;  %999 = vmatprep.subr.mxu1 %v593_v54 }
 0x168   :  { %929 = vmatpush1.msra.mxu0 %v590_v57  ;;  %962 = vmatprep.mubr.f32.mxu0 %v1488_v36 }
 0x169   :  { %1000 = vmatpush1.msra.mxu1 %v592_v58  ;;  %1033 = vmatprep.mubr.f32.mxu1 %v1488_v36 }
 0x16a   :  { %963 = vmatmul.mubr.f32.vlgmr.msra.gmra.mxu0 %v1553_v56  ;;  %1034 = vmatmul.mubr.f32.vlgmr.msra.gmra.mxu1 %v1553_v56 }
 0x209   :  { %v822_v4 = vpop.f32.mrf.mxu0  ;;  %v893_v5 = vpop.f32.mrf.mxu1 }
 0x20a   :  { %v823_v36 = vadd.f32 %v822_v4, %v719_v0  ;;  %v894_v6 = vadd.f32 %v893_v5, %v727_v1 }
 0x20b   :  { %v824_v7 = vpop.f32.mrf.mxu0  ;;  %v895_v8 = vpop.f32.mrf.mxu1 }
 0x20c   :  { %v1040_v56 = vmul.f32 0.5, %v823_v36  ;;  %v1042_v9 = vmul.f32 0.5, %v894_v6  ;;  %v825_v10 = vadd.f32 %v824_v7, %v723_v2  ;;  %v896_v11 = vadd.f32 %v895_v8, %v731_v3 }
 0x20e   :  { %1353 = vtanh.f32 %v1040_v56  ;;  %v1041_v12 = vmul.f32 0.5, %v825_v10  ;;  %v1043_v13 = vmul.f32 0.5, %v896_v11 }
 0x20f   :  { %1355 = vtanh.f32 %v1042_v9 }
 0x210   :  { %1357 = vtanh.f32 %v1041_v12 }
 0x211   :  { %1359 = vtanh.f32 %v1043_v13 }
 0x21b   :  { %v1354_v14 = vpop.eup %1353 }
 0x21c   :  { %v1356_v15 = vpop.eup %1355  ;;  %v1056_v16 = vadd.f32 1.0, %v1354_v14 }
 0x21d   :  { %v1358_v17 = vpop.eup %1357  ;;  %v1058_v18 = vadd.f32 1.0, %v1356_v15 }
 0x21e   :  { %v1360_v19 = vpop.eup %1359  ;;  %v1057_v20 = vadd.f32 1.0, %v1358_v17  ;;  %v1064_v22 = vmul.f32 0.5, %v1056_v16 }
 0x21f   :  { %v1059_v21 = vadd.f32 1.0, %v1360_v19  ;;  %v1066_v24 = vmul.f32 0.5, %v1058_v18 }
 0x220   :  { %v1065_v23 = vmul.f32 0.5, %v1057_v20 }
 0x221   :  { %v1067_v25 = vmul.f32 0.5, %v1059_v21 }
 0x222   :  { %v1080_v26 = vcombine.low %v1064_v22, %v1065_v23  ;;  %v1081_v27 = vcombine.high %v1064_v22, %v1065_v23 }
 0x223   :  { %v1082_v30 = vcombine.low %v1066_v24, %v1067_v25  ;;  %v1083_v31 = vcombine.high %v1066_v24, %v1067_v25 }
 0x224   :  { %v1090_v32 = vrot.slane %v1080_v26, %v1538_v55  ;;  %v1097_v33 = vrot.slane %v1081_v27, %v1538_v55 }
 0x225   :  { %v1104_v34 = vrot.slane %v1082_v30, %v1538_v55  ;;  %v1111_v35 = vrot.slane %v1083_v31, %v1538_v55 }
 0x227   :  { %v1112_v41 = vcombine.low %v1090_v32, %v1104_v34  ;;  %v1113_v43 = vcombine.high %v1090_v32, %v1104_v34  ;;  %v1114_v44 = vcombine.low %v1097_v33, %v1111_v35  ;;  %v1115_v45 = vcombine.high %v1097_v33, %v1111_v35 }
 0x229   :  { %1160 = vst [vmem:[#allocation10] sm:$0xff] %v1112_v41  ;;  %1162 = vst [vmem:[#allocation10 + $0x10] sm:$0xff] %v1113_v43 }
 0x22a   :  { %1164 = vst [vmem:[#allocation10 + $0x20] sm:$0xff] %v1114_v44  ;;  %1166 = vst [vmem:[#allocation10 + $0x30] sm:$0xff] %v1115_v45  ;;  %v964_v48 = vpop.f32.mrf.mxu0  ;;  %v1035_v49 = vpop.f32.mrf.mxu1 }
 0x22b   :  { %v965_v50 = vadd.f32 %v964_v48, %v735_v39  ;;  %v1036_v51 = vadd.f32 %v1035_v49, %v743_v40 }
 0x22c   :  { %v966_v52 = vpop.f32.mrf.mxu0  ;;  %v1037_v53 = vpop.f32.mrf.mxu1 }
 0x22d   :  { %v1044_v54 = vmul.f32 0.5, %v965_v50  ;;  %v1046_v42 = vmul.f32 0.5, %v1036_v51  ;;  %v967_v57 = vadd.f32 %v966_v52, %v739_v46  ;;  %v1038_v58 = vadd.f32 %v1037_v53, %v747_v47 }
 0x22f   :  { %1361 = vtanh.f32 %v1044_v54  ;;  %v1045_v59 = vmul.f32 0.5, %v967_v57  ;;  %v1047_v60 = vmul.f32 0.5, %v1038_v58 }
 0x230   :  { %1363 = vtanh.f32 %v1046_v42 }
 0x231   :  { %1365 = vtanh.f32 %v1045_v59 }
 0x232   :  { %1367 = vtanh.f32 %v1047_v60 }
 0x23c   :  { %v1362_v62 = vpop.eup %1361 }
 0x23d   :  { %v1364_v63 = vpop.eup %1363  ;;  %v1060_v0 = vadd.f32 1.0, %v1362_v62 }
 0x23e   :  { %v1366_v61 = vpop.eup %1365  ;;  %v1062_v1 = vadd.f32 1.0, %v1364_v63 }
 0x23f   :  { %v1368_v2 = vpop.eup %1367  ;;  %v1061_v3 = vadd.f32 1.0, %v1366_v61  ;;  %v1068_v5 = vmul.f32 0.5, %v1060_v0 }
 0x240   :  { %v1063_v4 = vadd.f32 1.0, %v1368_v2  ;;  %v1070_v6 = vmul.f32 0.5, %v1062_v1 }
 0x241   :  { %v1069_v36 = vmul.f32 0.5, %v1061_v3 }
 0x242   :  { %v1071_v7 = vmul.f32 0.5, %v1063_v4 }
 0x243   :  { %v1116_v8 = vcombine.low %v1068_v5, %v1069_v36  ;;  %v1117_v56 = vcombine.high %v1068_v5, %v1069_v36 }
 0x244   :  { %v1118_v9 = vcombine.low %v1070_v6, %v1071_v7  ;;  %v1119_v10 = vcombine.high %v1070_v6, %v1071_v7 }
 0x245   :  { %v1126_v11 = vrot.slane %v1116_v8, %v1538_v55  ;;  %v1133_v12 = vrot.slane %v1117_v56, %v1538_v55 }
 0x246   :  { %v1140_v13 = vrot.slane %v1118_v9, %v1538_v55  ;;  %v1147_v14 = vrot.slane %v1119_v10, %v1538_v55 }
 0x248   :  { %v1148_v15 = vcombine.low %v1126_v11, %v1140_v13  ;;  %v1149_v16 = vcombine.high %v1126_v11, %v1140_v13  ;;  %v1150_v17 = vcombine.low %v1133_v12, %v1147_v14  ;;  %v1151_v18 = vcombine.high %v1133_v12, %v1147_v14 }
 0x24a   :  { %1161 = vst [vmem:[#allocation10 + $0x8] sm:$0xff] %v1148_v15  ;;  %1163 = vst [vmem:[#allocation10 + $0x18] sm:$0xff] %v1149_v16 }
 0x24b   :  { %1165 = vst [vmem:[#allocation10 + $0x28] sm:$0xff] %v1150_v17  ;;  %1167 = vst [vmem:[#allocation10 + $0x38] sm:$0xff] %v1151_v18 }
 0x24c   :  { %1172 = vsyncadd [#allocation4], 768  ;;  %s1489_s2 = smov [#allocation10]  }
 0x24d   :  { %s1173_s18 = sshll.u32 %s1489_s2, 4  ;;  %s1174_s18 = int_to_ptr.vmem [resolvable:$true] %s1173_s18 }
 0x24e   :  { %s1449_s19 = scalar_lea.vmem %s1174_s18, 256  ;;  %s1453_s20 = scalar_lea.vmem %s1174_s18, 1024 }
 0x24f   :  { %p1450_p6 = scmp.ne.s32.totalorder %s1174_s18, %s1449_s19  ;;  %p1454_p7 = scmp.lt.s32.totalorder %s1174_s18, %s1174_s18 }
 0x250   :  { %p1455_p8 = scmp.lt.s32.totalorder %s1453_s20, %s1449_s19 }
 0x252   :  { %p1456_p9 = por %p1455_p8, %p1454_p7 }
 0x254   :  { %p1457_p10 = pnand %p1456_p9, %p1450_p6 }
 0x256   :  { %1460 = shalt.err (!%p1457_p10)
}
 0x257   :  { %1179 = dma.vmem_to_hbm [thread:$0]  %s1174_s18, 256, %s1588_s5, [#allocation4], %s1481_s29, %s1481_s29, %s1482_s30  }
 0x258   :  { %1475 = dma.done.wait [#allocation4], 1024  }
 0x259   :  { %1476 = vsyncadd [#allocation4], 4294966272 }
 0x25a   :  { %1183 = vsyncpa [#allocation3], 1 }
 0x25b   :  { %1184 = vsyncpa [#allocation6], 1 }
 0x25c   :  { %1185 = vsyncpa [#allocation9], 1 }
 0x25d   :  { %1186 = vsyncpa [#allocation4], 1 }

</bundles_post_ra>
